<compile_context>
chip_gen: v7x
topology: tpu7x:2x2x1
jax: 0.10.0
libtpu: 0.0.40
codegen_flags: <defaults>
</compile_context>

<pallas_src>
import jax
import jax.numpy as jnp
from jax.experimental import pallas as pl
from jax.experimental.pallas import tpu as pltpu


INPUT_SIZE = 28 * 28   # 784
HIDDEN = 256
LATENT = 15


def _round_up(x, m):
    return ((x + m - 1) // m) * m


def vae_kernel(
    x_ref, eps_ref,
    w1_ref, b1_ref, w2_ref, b2_ref, w3_ref, b3_ref,
    wmulv_ref, bmulv_ref,
    w4_ref, b4_ref, w5_ref, b5_ref, w6_ref, b6_ref, w7_ref, b7_ref,
    xhat_ref, mu_ref, logvar_ref,
):
    """One batch tile of the VAE MLP; all weights resident in VMEM (bf16)."""

    def linear(h, w_ref, b_ref):
        # bf16 MXU inputs, f32 accumulation, f32 bias add.
        return jnp.dot(h.astype(jnp.bfloat16), w_ref[...],
                       preferred_element_type=jnp.float32) + b_ref[...]

    x = x_ref[...]                                            # (T, 784) bf16

    # ---- encoder: 784 -> 256 -> 256 -> 256 (ReLU) ----
    h = jnp.maximum(linear(x, w1_ref, b1_ref), 0.0)
    h = jnp.maximum(linear(h, w2_ref, b2_ref), 0.0)
    h = jnp.maximum(linear(h, w3_ref, b3_ref), 0.0)

    # ---- fused latent heads: one (256, 2*LATENT) matmul instead of two ----
    mulv = linear(h, wmulv_ref, bmulv_ref)                    # (T, 2*LATENT)
    mu = mulv[:, :LATENT]
    logvar = mulv[:, LATENT:]

    # ---- reparametrize: z = mu + eps * exp(0.5 * logvar) ----
    z = mu + eps_ref[...] * jnp.exp(0.5 * logvar)

    # ---- decoder: 15 -> 256 -> 256 -> 256 -> 784 (Sigmoid) ----
    d = jnp.maximum(linear(z, w4_ref, b4_ref), 0.0)
    d = jnp.maximum(linear(d, w5_ref, b5_ref), 0.0)
    d = jnp.maximum(linear(d, w6_ref, b6_ref), 0.0)
    xhat = jax.nn.sigmoid(linear(d, w7_ref, b7_ref))          # (T, 784)

    xhat_ref[...] = xhat
    mu_ref[...] = mu
    logvar_ref[...] = logvar


def init_params(key, input_size=INPUT_SIZE, hidden=HIDDEN, latent=LATENT):
    """Deterministic PyTorch-style (uniform +/- 1/sqrt(fan_in)) init.
    Weights stored as (in, out) bf16; biases (1, out) f32; mu|logvar heads fused."""
    dims = [
        ("w1", input_size, hidden), ("w2", hidden, hidden), ("w3", hidden, hidden),
        ("wmu", hidden, latent), ("wlv", hidden, latent),
        ("w4", latent, hidden), ("w5", hidden, hidden), ("w6", hidden, hidden),
        ("w7", hidden, input_size),
    ]
    raw = {}
    for name, fan_in, fan_out in dims:
        key, kw, kb = jax.random.split(key, 3)
        bound = 1.0 / jnp.sqrt(jnp.float32(fan_in))
        raw[name] = jax.random.uniform(
            kw, (fan_in, fan_out), jnp.float32, minval=-bound, maxval=bound)
        raw[name.replace("w", "b", 1)] = jax.random.uniform(
            kb, (1, fan_out), jnp.float32, minval=-bound, maxval=bound)

    params = {}
    for name in ("w1", "w2", "w3", "w4", "w5", "w6", "w7"):
        params[name] = raw[name].astype(jnp.bfloat16)
        params[name.replace("w", "b", 1)] = raw[name.replace("w", "b", 1)]
    params["wmulv"] = jnp.concatenate([raw["wmu"], raw["wlv"]], axis=1).astype(jnp.bfloat16)
    params["bmulv"] = jnp.concatenate([raw["bmu"], raw["blv"]], axis=1)
    return params


@jax.jit
def vae_forward(x_nchw, eps, params):
    """x_nchw: (N, 1, 28, 28) f32.  Returns (x_hat (N,1,28,28), mu (N,Z), logvar (N,Z))."""
    N = x_nchw.shape[0]
    x_flat = x_nchw.reshape(N, INPUT_SIZE).astype(jnp.bfloat16)   # nn.Flatten + bf16

    # Batch tile: MXU-friendly (up to 256 rows) but no larger than the padded batch.
    tile_n = min(256, _round_up(N, 8))
    n_pad = _round_up(N, tile_n)
    if n_pad != N:
        x_flat = jnp.pad(x_flat, ((0, n_pad - N), (0, 0)))
        eps_p = jnp.pad(eps, ((0, n_pad - N), (0, 0)))
    else:
        eps_p = eps
    grid = (n_pad // tile_n,)

    def row_spec(cols):
        return pl.BlockSpec((tile_n, cols), lambda i: (i, 0))

    def resident_spec(arr):
        # Same block index every step -> weight stays in VMEM across the grid.
        return pl.BlockSpec(arr.shape, lambda i: (0, 0))

    weights = [
        params["w1"], params["b1"], params["w2"], params["b2"],
        params["w3"], params["b3"], params["wmulv"], params["bmulv"],
        params["w4"], params["b4"], params["w5"], params["b5"],
        params["w6"], params["b6"], params["w7"], params["b7"],
    ]

    in_specs = [row_spec(INPUT_SIZE), row_spec(LATENT)] + [resident_spec(a) for a in weights]
    out_specs = (row_spec(INPUT_SIZE), row_spec(LATENT), row_spec(LATENT))

    flops_per_row = 2 * (INPUT_SIZE * HIDDEN + 2 * HIDDEN * HIDDEN      # encoder
                         + HIDDEN * 2 * LATENT                          # fused heads
                         + LATENT * HIDDEN + 2 * HIDDEN * HIDDEN        # decoder
                         + HIDDEN * INPUT_SIZE)
    in_bytes = (x_flat.size * x_flat.dtype.itemsize
                + eps_p.size * eps_p.dtype.itemsize
                + sum(a.size * a.dtype.itemsize for a in weights))
    out_bytes = n_pad * (INPUT_SIZE + 2 * LATENT) * 4
    cost = pl.CostEstimate(
        flops=flops_per_row * n_pad,
        transcendentals=n_pad * (INPUT_SIZE + LATENT),   # sigmoid + exp(0.5*logvar)
        bytes_accessed=in_bytes + out_bytes,
    )

    xhat_flat, mu, logvar = pl.pallas_call(
        vae_kernel,
        grid=grid,
        out_shape=(
            jax.ShapeDtypeStruct((n_pad, INPUT_SIZE), jnp.float32),
            jax.ShapeDtypeStruct((n_pad, LATENT), jnp.float32),
            jax.ShapeDtypeStruct((n_pad, LATENT), jnp.float32),
        ),
        in_specs=in_specs,
        out_specs=out_specs,
        compiler_params=pltpu.CompilerParams(dimension_semantics=("parallel",)),
        cost_estimate=cost,
    )(x_flat, eps_p, *weights)

    x_hat = xhat_flat[:N].reshape(N, 1, 28, 28)              # nn.Unflatten(1, (1, 28, 28))
    return x_hat, mu[:N], logvar[:N]


if __name__ == "__main__":
    key = jax.random.PRNGKey(0)
    k_params, k_x, k_eps = jax.random.split(key, 3)

    N = 2
    params = init_params(k_params)
    # Batch of "images" in NCHW, values in [0, 1) like normalized MNIST.
    x = jax.random.uniform(k_x, (N, 1, 28, 28), jnp.float32)
    # Reparametrization noise (torch.randn equivalent), drawn deterministically.
    eps = jax.random.normal(k_eps, (N, LATENT), jnp.float32)

    x_hat, mu, logvar = vae_forward(x, eps, params)
    jax.block_until_ready((x_hat, mu, logvar))

    assert x_hat.shape == (N, 1, 28, 28)
    assert mu.shape == (N, LATENT)
    assert logvar.shape == (N, LATENT)
    assert bool(jnp.all((x_hat >= 0.0) & (x_hat <= 1.0)))
    assert bool(jnp.all(jnp.isfinite(x_hat))) and bool(jnp.all(jnp.isfinite(mu)))

    print("KERNEL_OK")
</pallas_src>

<mosaic_0001>
module attributes {stable_mosaic.version = 11 : i64} {
  func.func @vae_kernel(%arg0: i32, %arg1: memref<8x784xbf16, #tpu.memory_space<vmem>>, %arg2: memref<8x15xf32, #tpu.memory_space<vmem>>, %arg3: memref<784x256xbf16, #tpu.memory_space<vmem>>, %arg4: memref<1x256xf32, #tpu.memory_space<vmem>>, %arg5: memref<256x256xbf16, #tpu.memory_space<vmem>>, %arg6: memref<1x256xf32, #tpu.memory_space<vmem>>, %arg7: memref<256x256xbf16, #tpu.memory_space<vmem>>, %arg8: memref<1x256xf32, #tpu.memory_space<vmem>>, %arg9: memref<256x30xbf16, #tpu.memory_space<vmem>>, %arg10: memref<1x30xf32, #tpu.memory_space<vmem>>, %arg11: memref<15x256xbf16, #tpu.memory_space<vmem>>, %arg12: memref<1x256xf32, #tpu.memory_space<vmem>>, %arg13: memref<256x256xbf16, #tpu.memory_space<vmem>>, %arg14: memref<1x256xf32, #tpu.memory_space<vmem>>, %arg15: memref<256x256xbf16, #tpu.memory_space<vmem>>, %arg16: memref<1x256xf32, #tpu.memory_space<vmem>>, %arg17: memref<256x784xbf16, #tpu.memory_space<vmem>>, %arg18: memref<1x784xf32, #tpu.memory_space<vmem>>, %arg19: memref<8x784xf32, #tpu.memory_space<vmem>>, %arg20: memref<8x15xf32, #tpu.memory_space<vmem>>, %arg21: memref<8x15xf32, #tpu.memory_space<vmem>>) attributes {dimension_semantics = [#tpu.dimension_semantics<parallel>], iteration_bounds = array<i64: 1>, scalar_prefetch = 0 : i64, scratch_operands = 0 : i64, tpu.core_type = #tpu.core_type<tc>, window_params = [{transform_indices = @transform_0, window_bounds = array<i64: 8, 784>}, {transform_indices = @transform_1, window_bounds = array<i64: 8, 15>}, {pipeline_mode = #tpu.pipeline_mode<synchronous>, transform_indices = @transform_2, window_bounds = array<i64: 784, 256>}, {pipeline_mode = #tpu.pipeline_mode<synchronous>, transform_indices = @transform_3, window_bounds = array<i64: 1, 256>}, {pipeline_mode = #tpu.pipeline_mode<synchronous>, transform_indices = @transform_4, window_bounds = array<i64: 256, 256>}, {pipeline_mode = #tpu.pipeline_mode<synchronous>, transform_indices = @transform_5, window_bounds = array<i64: 1, 256>}, {pipeline_mode = #tpu.pipeline_mode<synchronous>, transform_indices = @transform_6, window_bounds = array<i64: 256, 256>}, {pipeline_mode = #tpu.pipeline_mode<synchronous>, transform_indices = @transform_7, window_bounds = array<i64: 1, 256>}, {pipeline_mode = #tpu.pipeline_mode<synchronous>, transform_indices = @transform_8, window_bounds = array<i64: 256, 30>}, {pipeline_mode = #tpu.pipeline_mode<synchronous>, transform_indices = @transform_9, window_bounds = array<i64: 1, 30>}, {pipeline_mode = #tpu.pipeline_mode<synchronous>, transform_indices = @transform_10, window_bounds = array<i64: 15, 256>}, {pipeline_mode = #tpu.pipeline_mode<synchronous>, transform_indices = @transform_11, window_bounds = array<i64: 1, 256>}, {pipeline_mode = #tpu.pipeline_mode<synchronous>, transform_indices = @transform_12, window_bounds = array<i64: 256, 256>}, {pipeline_mode = #tpu.pipeline_mode<synchronous>, transform_indices = @transform_13, window_bounds = array<i64: 1, 256>}, {pipeline_mode = #tpu.pipeline_mode<synchronous>, transform_indices = @transform_14, window_bounds = array<i64: 256, 256>}, {pipeline_mode = #tpu.pipeline_mode<synchronous>, transform_indices = @transform_15, window_bounds = array<i64: 1, 256>}, {pipeline_mode = #tpu.pipeline_mode<synchronous>, transform_indices = @transform_16, window_bounds = array<i64: 256, 784>}, {pipeline_mode = #tpu.pipeline_mode<synchronous>, transform_indices = @transform_17, window_bounds = array<i64: 1, 784>}, {transform_indices = @transform_18, window_bounds = array<i64: 8, 784>}, {transform_indices = @transform_19, window_bounds = array<i64: 8, 15>}, {transform_indices = @transform_20, window_bounds = array<i64: 8, 15>}]} {
    %c0 = arith.constant 0 : index
    %c0_0 = arith.constant 0 : index
    %0 = vector.load %arg1[%c0, %c0_0] : memref<8x784xbf16, #tpu.memory_space<vmem>>, vector<8x784xbf16>
    %c0_1 = arith.constant 0 : index
    %c0_2 = arith.constant 0 : index
    %1 = vector.load %arg3[%c0_1, %c0_2] : memref<784x256xbf16, #tpu.memory_space<vmem>>, vector<784x256xbf16>
    %cst = arith.constant dense<0.000000e+00> : vector<8x256xf32>
    %2 = tpu.matmul %0, %1, %cst {dimension_numbers = #tpu.dot_dimension_numbers<[1], [0], [0], [1], [0, 0, 1, 1], [], []>} : vector<8x784xbf16>, vector<784x256xbf16>, vector<8x256xf32> -> vector<8x256xf32>
    %c0_3 = arith.constant 0 : index
    %c0_4 = arith.constant 0 : index
    %3 = vector.load %arg4[%c0_3, %c0_4] : memref<1x256xf32, #tpu.memory_space<vmem>>, vector<1x256xf32>
    %4 = vector.broadcast %3 : vector<1x256xf32> to vector<8x256xf32>
    %5 = arith.addf %2, %4 : vector<8x256xf32>
    %cst_5 = arith.constant 0.000000e+00 : f32
    %6 = vector.broadcast %cst_5 : f32 to vector<8x256xf32>
    %7 = arith.maximumf %5, %6 : vector<8x256xf32>
    %8 = arith.truncf %7 : vector<8x256xf32> to vector<8x256xbf16>
    %c0_6 = arith.constant 0 : index
    %c0_7 = arith.constant 0 : index
    %9 = vector.load %arg5[%c0_6, %c0_7] : memref<256x256xbf16, #tpu.memory_space<vmem>>, vector<256x256xbf16>
    %cst_8 = arith.constant dense<0.000000e+00> : vector<8x256xf32>
    %10 = tpu.matmul %8, %9, %cst_8 {dimension_numbers = #tpu.dot_dimension_numbers<[1], [0], [0], [1], [0, 0, 1, 1], [], []>} : vector<8x256xbf16>, vector<256x256xbf16>, vector<8x256xf32> -> vector<8x256xf32>
    %c0_9 = arith.constant 0 : index
    %c0_10 = arith.constant 0 : index
    %11 = vector.load %arg6[%c0_9, %c0_10] : memref<1x256xf32, #tpu.memory_space<vmem>>, vector<1x256xf32>
    %12 = vector.broadcast %11 : vector<1x256xf32> to vector<8x256xf32>
    %13 = arith.addf %10, %12 : vector<8x256xf32>
    %cst_11 = arith.constant 0.000000e+00 : f32
    %14 = vector.broadcast %cst_11 : f32 to vector<8x256xf32>
    %15 = arith.maximumf %13, %14 : vector<8x256xf32>
    %16 = arith.truncf %15 : vector<8x256xf32> to vector<8x256xbf16>
    %c0_12 = arith.constant 0 : index
    %c0_13 = arith.constant 0 : index
    %17 = vector.load %arg7[%c0_12, %c0_13] : memref<256x256xbf16, #tpu.memory_space<vmem>>, vector<256x256xbf16>
    %cst_14 = arith.constant dense<0.000000e+00> : vector<8x256xf32>
    %18 = tpu.matmul %16, %17, %cst_14 {dimension_numbers = #tpu.dot_dimension_numbers<[1], [0], [0], [1], [0, 0, 1, 1], [], []>} : vector<8x256xbf16>, vector<256x256xbf16>, vector<8x256xf32> -> vector<8x256xf32>
    %c0_15 = arith.constant 0 : index
    %c0_16 = arith.constant 0 : index
    %19 = vector.load %arg8[%c0_15, %c0_16] : memref<1x256xf32, #tpu.memory_space<vmem>>, vector<1x256xf32>
    %20 = vector.broadcast %19 : vector<1x256xf32> to vector<8x256xf32>
    %21 = arith.addf %18, %20 : vector<8x256xf32>
    %cst_17 = arith.constant 0.000000e+00 : f32
    %22 = vector.broadcast %cst_17 : f32 to vector<8x256xf32>
    %23 = arith.maximumf %21, %22 : vector<8x256xf32>
    %24 = arith.truncf %23 : vector<8x256xf32> to vector<8x256xbf16>
    %c0_18 = arith.constant 0 : index
    %c0_19 = arith.constant 0 : index
    %25 = vector.load %arg9[%c0_18, %c0_19] : memref<256x30xbf16, #tpu.memory_space<vmem>>, vector<256x30xbf16>
    %cst_20 = arith.constant dense<0.000000e+00> : vector<8x30xf32>
    %26 = tpu.matmul %24, %25, %cst_20 {dimension_numbers = #tpu.dot_dimension_numbers<[1], [0], [0], [1], [0, 0, 1, 1], [], []>} : vector<8x256xbf16>, vector<256x30xbf16>, vector<8x30xf32> -> vector<8x30xf32>
    %c0_21 = arith.constant 0 : index
    %c0_22 = arith.constant 0 : index
    %27 = vector.load %arg10[%c0_21, %c0_22] : memref<1x30xf32, #tpu.memory_space<vmem>>, vector<1x30xf32>
    %28 = vector.broadcast %27 : vector<1x30xf32> to vector<8x30xf32>
    %29 = arith.addf %26, %28 : vector<8x30xf32>
    %30 = vector.extract_strided_slice %29 {offsets = [0, 0], sizes = [8, 15], strides = [1, 1]} : vector<8x30xf32> to vector<8x15xf32>
    %31 = vector.extract_strided_slice %29 {offsets = [0, 15], sizes = [8, 15], strides = [1, 1]} : vector<8x30xf32> to vector<8x15xf32>
    %c0_23 = arith.constant 0 : index
    %c0_24 = arith.constant 0 : index
    %32 = vector.load %arg2[%c0_23, %c0_24] : memref<8x15xf32, #tpu.memory_space<vmem>>, vector<8x15xf32>
    %cst_25 = arith.constant 5.000000e-01 : f32
    %33 = vector.broadcast %cst_25 : f32 to vector<8x15xf32>
    %34 = arith.mulf %33, %31 : vector<8x15xf32>
    %35 = math.exp %34 : vector<8x15xf32>
    %36 = arith.mulf %32, %35 : vector<8x15xf32>
    %37 = arith.addf %30, %36 : vector<8x15xf32>
    %38 = arith.truncf %37 : vector<8x15xf32> to vector<8x15xbf16>
    %c0_26 = arith.constant 0 : index
    %c0_27 = arith.constant 0 : index
    %39 = vector.load %arg11[%c0_26, %c0_27] : memref<15x256xbf16, #tpu.memory_space<vmem>>, vector<15x256xbf16>
    %cst_28 = arith.constant dense<0.000000e+00> : vector<8x256xf32>
    %40 = tpu.matmul %38, %39, %cst_28 {dimension_numbers = #tpu.dot_dimension_numbers<[1], [0], [0], [1], [0, 0, 1, 1], [], []>} : vector<8x15xbf16>, vector<15x256xbf16>, vector<8x256xf32> -> vector<8x256xf32>
    %c0_29 = arith.constant 0 : index
    %c0_30 = arith.constant 0 : index
    %41 = vector.load %arg12[%c0_29, %c0_30] : memref<1x256xf32, #tpu.memory_space<vmem>>, vector<1x256xf32>
    %42 = vector.broadcast %41 : vector<1x256xf32> to vector<8x256xf32>
    %43 = arith.addf %40, %42 : vector<8x256xf32>
    %cst_31 = arith.constant 0.000000e+00 : f32
    %44 = vector.broadcast %cst_31 : f32 to vector<8x256xf32>
    %45 = arith.maximumf %43, %44 : vector<8x256xf32>
    %46 = arith.truncf %45 : vector<8x256xf32> to vector<8x256xbf16>
    %c0_32 = arith.constant 0 : index
    %c0_33 = arith.constant 0 : index
    %47 = vector.load %arg13[%c0_32, %c0_33] : memref<256x256xbf16, #tpu.memory_space<vmem>>, vector<256x256xbf16>
    %cst_34 = arith.constant dense<0.000000e+00> : vector<8x256xf32>
    %48 = tpu.matmul %46, %47, %cst_34 {dimension_numbers = #tpu.dot_dimension_numbers<[1], [0], [0], [1], [0, 0, 1, 1], [], []>} : vector<8x256xbf16>, vector<256x256xbf16>, vector<8x256xf32> -> vector<8x256xf32>
    %c0_35 = arith.constant 0 : index
    %c0_36 = arith.constant 0 : index
    %49 = vector.load %arg14[%c0_35, %c0_36] : memref<1x256xf32, #tpu.memory_space<vmem>>, vector<1x256xf32>
    %50 = vector.broadcast %49 : vector<1x256xf32> to vector<8x256xf32>
    %51 = arith.addf %48, %50 : vector<8x256xf32>
    %cst_37 = arith.constant 0.000000e+00 : f32
    %52 = vector.broadcast %cst_37 : f32 to vector<8x256xf32>
    %53 = arith.maximumf %51, %52 : vector<8x256xf32>
    %54 = arith.truncf %53 : vector<8x256xf32> to vector<8x256xbf16>
    %c0_38 = arith.constant 0 : index
    %c0_39 = arith.constant 0 : index
    %55 = vector.load %arg15[%c0_38, %c0_39] : memref<256x256xbf16, #tpu.memory_space<vmem>>, vector<256x256xbf16>
    %cst_40 = arith.constant dense<0.000000e+00> : vector<8x256xf32>
    %56 = tpu.matmul %54, %55, %cst_40 {dimension_numbers = #tpu.dot_dimension_numbers<[1], [0], [0], [1], [0, 0, 1, 1], [], []>} : vector<8x256xbf16>, vector<256x256xbf16>, vector<8x256xf32> -> vector<8x256xf32>
    %c0_41 = arith.constant 0 : index
    %c0_42 = arith.constant 0 : index
    %57 = vector.load %arg16[%c0_41, %c0_42] : memref<1x256xf32, #tpu.memory_space<vmem>>, vector<1x256xf32>
    %58 = vector.broadcast %57 : vector<1x256xf32> to vector<8x256xf32>
    %59 = arith.addf %56, %58 : vector<8x256xf32>
    %cst_43 = arith.constant 0.000000e+00 : f32
    %60 = vector.broadcast %cst_43 : f32 to vector<8x256xf32>
    %61 = arith.maximumf %59, %60 : vector<8x256xf32>
    %62 = arith.truncf %61 : vector<8x256xf32> to vector<8x256xbf16>
    %c0_44 = arith.constant 0 : index
    %c0_45 = arith.constant 0 : index
    %63 = vector.load %arg17[%c0_44, %c0_45] : memref<256x784xbf16, #tpu.memory_space<vmem>>, vector<256x784xbf16>
    %cst_46 = arith.constant dense<0.000000e+00> : vector<8x784xf32>
    %64 = tpu.matmul %62, %63, %cst_46 {dimension_numbers = #tpu.dot_dimension_numbers<[1], [0], [0], [1], [0, 0, 1, 1], [], []>} : vector<8x256xbf16>, vector<256x784xbf16>, vector<8x784xf32> -> vector<8x784xf32>
    %c0_47 = arith.constant 0 : index
    %c0_48 = arith.constant 0 : index
    %65 = vector.load %arg18[%c0_47, %c0_48] : memref<1x784xf32, #tpu.memory_space<vmem>>, vector<1x784xf32>
    %66 = vector.broadcast %65 : vector<1x784xf32> to vector<8x784xf32>
    %67 = arith.addf %64, %66 : vector<8x784xf32>
    %68 = arith.negf %67 : vector<8x784xf32>
    %69 = math.exp %68 : vector<8x784xf32>
    %cst_49 = arith.constant 1.000000e+00 : f32
    %70 = vector.broadcast %cst_49 : f32 to vector<8x784xf32>
    %71 = arith.addf %70, %69 : vector<8x784xf32>
    %72 = arith.divf %70, %71 : vector<8x784xf32>
    %c0_50 = arith.constant 0 : index
    %c0_51 = arith.constant 0 : index
    %73 = vector.load %arg19[%c0_50, %c0_51] : memref<8x784xf32, #tpu.memory_space<vmem>>, vector<8x784xf32>
    tpu.vector_store %arg19[%c0_50, %c0_51], %72 {strides = array<i32>} : memref<8x784xf32, #tpu.memory_space<vmem>>, vector<8x784xf32>,
    %c0_52 = arith.constant 0 : index
    %c0_53 = arith.constant 0 : index
    %74 = vector.load %arg20[%c0_52, %c0_53] : memref<8x15xf32, #tpu.memory_space<vmem>>, vector<8x15xf32>
    tpu.vector_store %arg20[%c0_52, %c0_53], %30 {strides = array<i32>} : memref<8x15xf32, #tpu.memory_space<vmem>>, vector<8x15xf32>,
    %c0_54 = arith.constant 0 : index
    %c0_55 = arith.constant 0 : index
    %75 = vector.load %arg21[%c0_54, %c0_55] : memref<8x15xf32, #tpu.memory_space<vmem>>, vector<8x15xf32>
    tpu.vector_store %arg21[%c0_54, %c0_55], %31 {strides = array<i32>} : memref<8x15xf32, #tpu.memory_space<vmem>>, vector<8x15xf32>,
    return
  }
  func.func @transform_0(%arg0: i32) -> (i32, i32) {
    %c0_i32 = arith.constant 0 : i32
    %c0_i32_0 = arith.constant 0 : i32
    return %arg0, %c0_i32 : i32, i32
  }
  func.func @transform_1(%arg0: i32) -> (i32, i32) {
    %c0_i32 = arith.constant 0 : i32
    %c0_i32_0 = arith.constant 0 : i32
    return %arg0, %c0_i32 : i32, i32
  }
  func.func @transform_2(%arg0: i32) -> (i32, i32) {
    %c0_i32 = arith.constant 0 : i32
    %c0_i32_0 = arith.constant 0 : i32
    %c0_i32_1 = arith.constant 0 : i32
    return %c0_i32, %c0_i32_0 : i32, i32
  }
  func.func @transform_3(%arg0: i32) -> (i32, i32) {
    %c0_i32 = arith.constant 0 : i32
    %c0_i32_0 = arith.constant 0 : i32
    %c0_i32_1 = arith.constant 0 : i32
    return %c0_i32, %c0_i32_0 : i32, i32
  }
  func.func @transform_4(%arg0: i32) -> (i32, i32) {
    %c0_i32 = arith.constant 0 : i32
    %c0_i32_0 = arith.constant 0 : i32
    %c0_i32_1 = arith.constant 0 : i32
    return %c0_i32, %c0_i32_0 : i32, i32
  }
  func.func @transform_5(%arg0: i32) -> (i32, i32) {
    %c0_i32 = arith.constant 0 : i32
    %c0_i32_0 = arith.constant 0 : i32
    %c0_i32_1 = arith.constant 0 : i32
    return %c0_i32, %c0_i32_0 : i32, i32
  }
  func.func @transform_6(%arg0: i32) -> (i32, i32) {
    %c0_i32 = arith.constant 0 : i32
    %c0_i32_0 = arith.constant 0 : i32
    %c0_i32_1 = arith.constant 0 : i32
    return %c0_i32, %c0_i32_0 : i32, i32
  }
  func.func @transform_7(%arg0: i32) -> (i32, i32) {
    %c0_i32 = arith.constant 0 : i32
    %c0_i32_0 = arith.constant 0 : i32
    %c0_i32_1 = arith.constant 0 : i32
    return %c0_i32, %c0_i32_0 : i32, i32
  }
  func.func @transform_8(%arg0: i32) -> (i32, i32) {
    %c0_i32 = arith.constant 0 : i32
    %c0_i32_0 = arith.constant 0 : i32
    %c0_i32_1 = arith.constant 0 : i32
    return %c0_i32, %c0_i32_0 : i32, i32
  }
  func.func @transform_9(%arg0: i32) -> (i32, i32) {
    %c0_i32 = arith.constant 0 : i32
    %c0_i32_0 = arith.constant 0 : i32
    %c0_i32_1 = arith.constant 0 : i32
    return %c0_i32, %c0_i32_0 : i32, i32
  }
  func.func @transform_10(%arg0: i32) -> (i32, i32) {
    %c0_i32 = arith.constant 0 : i32
    %c0_i32_0 = arith.constant 0 : i32
    %c0_i32_1 = arith.constant 0 : i32
    return %c0_i32, %c0_i32_0 : i32, i32
  }
  func.func @transform_11(%arg0: i32) -> (i32, i32) {
    %c0_i32 = arith.constant 0 : i32
    %c0_i32_0 = arith.constant 0 : i32
    %c0_i32_1 = arith.constant 0 : i32
    return %c0_i32, %c0_i32_0 : i32, i32
  }
  func.func @transform_12(%arg0: i32) -> (i32, i32) {
    %c0_i32 = arith.constant 0 : i32
    %c0_i32_0 = arith.constant 0 : i32
    %c0_i32_1 = arith.constant 0 : i32
    return %c0_i32, %c0_i32_0 : i32, i32
  }
  func.func @transform_13(%arg0: i32) -> (i32, i32) {
    %c0_i32 = arith.constant 0 : i32
    %c0_i32_0 = arith.constant 0 : i32
    %c0_i32_1 = arith.constant 0 : i32
    return %c0_i32, %c0_i32_0 : i32, i32
  }
  func.func @transform_14(%arg0: i32) -> (i32, i32) {
    %c0_i32 = arith.constant 0 : i32
    %c0_i32_0 = arith.constant 0 : i32
    %c0_i32_1 = arith.constant 0 : i32
    return %c0_i32, %c0_i32_0 : i32, i32
  }
  func.func @transform_15(%arg0: i32) -> (i32, i32) {
    %c0_i32 = arith.constant 0 : i32
    %c0_i32_0 = arith.constant 0 : i32
    %c0_i32_1 = arith.constant 0 : i32
    return %c0_i32, %c0_i32_0 : i32, i32
  }
  func.func @transform_16(%arg0: i32) -> (i32, i32) {
    %c0_i32 = arith.constant 0 : i32
    %c0_i32_0 = arith.constant 0 : i32
    %c0_i32_1 = arith.constant 0 : i32
    return %c0_i32, %c0_i32_0 : i32, i32
  }
  func.func @transform_17(%arg0: i32) -> (i32, i32) {
    %c0_i32 = arith.constant 0 : i32
    %c0_i32_0 = arith.constant 0 : i32
    %c0_i32_1 = arith.constant 0 : i32
    return %c0_i32, %c0_i32_0 : i32, i32
  }
  func.func @transform_18(%arg0: i32) -> (i32, i32) {
    %c0_i32 = arith.constant 0 : i32
    %c0_i32_0 = arith.constant 0 : i32
    return %arg0, %c0_i32 : i32, i32
  }
  func.func @transform_19(%arg0: i32) -> (i32, i32) {
    %c0_i32 = arith.constant 0 : i32
    %c0_i32_0 = arith.constant 0 : i32
    return %arg0, %c0_i32 : i32, i32
  }
  func.func @transform_20(%arg0: i32) -> (i32, i32) {
    %c0_i32 = arith.constant 0 : i32
    %c0_i32_0 = arith.constant 0 : i32
    return %arg0, %c0_i32 : i32, i32
  }
}

</mosaic_0001>

<bundles_post_ra>
// kernel: vae_forward.1
= control target key start
LH: loop header
LB: loop body
LE: loop exit
PB: predicated region body
PF: predicated region fallthrough
CT: control target
= control target key end

     0   :  { %vm691_vm0 = vcmask 130048   ;;  %vm1573_vm1 = vcmask 1046528   ;;  %vm1574_vm2 = vcmask 1047552   ;;  %vm1569_vm3 = vcmask 121856   ;;  %s5389_s2 = inlined_call_operand.vmem [shape: bf16[784,256], index: 2, kind: input, shape index: {}]   ;;  %s5390_s0 = inlined_call_operand.vmem [shape: bf16[8,784], index: 0, kind: input, shape index: {}]   ;;  %s5391_s4 = inlined_call_operand.vmem [shape: bf16[256,256], index: 4, kind: input, shape index: {}]   ;;  %s5392_s6 = inlined_call_operand.vmem [shape: bf16[256,256], index: 6, kind: input, shape index: {}]   ;;  %s5393_s3 = inlined_call_operand.vmem [shape: f32[1,256], index: 3, kind: input, shape index: {}]   ;;  %s5394_s8 = inlined_call_operand.vmem [shape: bf16[256,30], index: 8, kind: input, shape index: {}]   ;;  %s5395_s5 = inlined_call_operand.vmem [shape: f32[1,256], index: 5, kind: input, shape index: {}]   ;;  %s5396_s7 = inlined_call_operand.vmem [shape: f32[1,256], index: 7, kind: input, shape index: {}]   ;;  %s5397_s10 = inlined_call_operand.vmem [shape: bf16[15,256], index: 10, kind: input, shape index: {}]   ;;  %s5398_s9 = inlined_call_operand.vmem [shape: f32[1,30], index: 9, kind: input, shape index: {}]   ;;  %s5399_s19 = inlined_call_operand.vmem [shape: f32[8,15], index: 19, kind: output, shape index: {1}]   ;;  %s5400_s12 = inlined_call_operand.vmem [shape: bf16[256,256], index: 12, kind: input, shape index: {}]   ;;  %s5401_s1 = inlined_call_operand.vmem [shape: f32[8,15], index: 1, kind: input, shape index: {}]   ;;  %s5402_s20 = inlined_call_operand.vmem [shape: f32[8,15], index: 20, kind: output, shape index: {2}]   ;;  %s5403_s14 = inlined_call_operand.vmem [shape: bf16[256,256], index: 14, kind: input, shape index: {}]   ;;  %s5404_s11 = inlined_call_operand.vmem [shape: f32[1,256], index: 11, kind: input, shape index: {}]   ;;  %s5405_s16 = inlined_call_operand.vmem [shape: bf16[256,784], index: 16, kind: input, shape index: {}]   ;;  %s5406_s13 = inlined_call_operand.vmem [shape: f32[1,256], index: 13, kind: input, shape index: {}]   ;;  %s5407_s15 = inlined_call_operand.vmem [shape: f32[1,256], index: 15, kind: input, shape index: {}]   ;;  %s5408_s17 = inlined_call_operand.vmem [shape: f32[1,784], index: 17, kind: input, shape index: {}]   ;;  %s5409_s18 = inlined_call_operand.vmem [shape: f32[8,784], index: 18, kind: output, shape index: {0}]  }
   0x1   :  { %5414 = sst [smem:[#allocation2_spill]] %s5389_s2 }
   0x2   :  { %5415 = sst [smem:[#allocation3_spill]] %s5390_s0  ;;  %s5419_s23 = sld [smem:[#allocation2_spill]] }
   0x3   :  { %5416 = sst [smem:[#allocation4_spill]] %s5391_s4  ;;  %s5420_s0 = sld [smem:[#allocation3_spill]] }
   0x4   :  { %5417 = sst [smem:[#allocation5_spill]] %s5392_s6  ;;  %s5421_s21 = sld [smem:[#allocation4_spill]] }
   0x5   :  { %5418 = sst [smem:[#allocation6_spill]] %s5393_s3  ;;  %s5422_s3 = sld [smem:[#allocation5_spill]] }
   0x6   :  { %s5423_s2 = sld [smem:[#allocation6_spill]] }
   0x8   :  { %v3531_v0 = vld [vmem:[%s5419_s23 + $0x4] ss:$8 sps:$4 sm:$0xff]   ;;  %v3533_v1 = vld [vmem:[%s5419_s23] ss:$8 sps:$4 sm:$0xff]   ;;  %v3534_v2 = vld [vmem:[%s5419_s23 + $0x14] ss:$8 sps:$4 sm:$0xff]  }
   0x9   :  { %695 = vmatprep.subr.bf16.mxu0 %v3531_v0  ;;  %v3536_v3 = vld [vmem:[%s5419_s23 + $0x10] ss:$8 sps:$4 sm:$0xff]   ;;  %v3537_v4 = vld [vmem:[%s5419_s23 + $0x24] ss:$8 sps:$4 sm:$0xff]   ;;  %v3539_v5 = vld [vmem:[%s5419_s23 + $0x20] ss:$8 sps:$4 sm:$0xff]  }
   0xa   :  { %696 = vmatpush1.bf16.msra.mxu0 %v3533_v1  ;;  %v3540_v6 = vld [vmem:[%s5419_s23 + $0x34] ss:$8 sps:$4 sm:$0xff]   ;;  %v3542_v7 = vld [vmem:[%s5419_s23 + $0x30] ss:$8 sps:$4 sm:$0xff]   ;;  %v3543_v8 = vld [vmem:[%s5419_s23 + $0x44] ss:$8 sps:$4 sm:$0xff]  }
   0xb   :  { %697 = vmatprep.subr.bf16.mxu0 %v3534_v2  ;;  %v3545_v9 = vld [vmem:[%s5419_s23 + $0x40] ss:$8 sps:$4 sm:$0xff]   ;;  %v3546_v10 = vld [vmem:[%s5419_s23 + $0x54] ss:$8 sps:$4 sm:$0xff]   ;;  %v3548_v11 = vld [vmem:[%s5419_s23 + $0x50] ss:$8 sps:$4 sm:$0xff]  }
   0xc   :  { %v3549_v12 = vld [vmem:[%s5419_s23 + $0x64] ss:$8 sps:$4 sm:$0xff]   ;;  %v3551_v15 = vld [vmem:[%s5419_s23 + $0x60] ss:$8 sps:$4 sm:$0xff]   ;;  %v3552_v16 = vld [vmem:[%s5419_s23 + $0x74] ss:$8 sps:$4 sm:$0xff]  }
   0xd   :  { %v63_v13 = vld [vmem:[%s5420_s0] sm:$0xff]  ;;  %v3554_v17 = vld [vmem:[%s5419_s23 + $0x70] ss:$8 sps:$4 sm:$0xff]   ;;  %v3558_v20 = vld [vmem:[%s5419_s23 + $0x94] ss:$8 sps:$4 sm:$0xff]  }
   0xe   :  { %698 = vmatpush1.bf16.msra.mxu0 %v3536_v3  ;;  %v3098_v14 = vcombine.high %v63_v13, %v63_v13  ;;  %v3555_v18 = vld [vmem:[%s5419_s23 + $0x84] ss:$8 sps:$4 sm:$0xff]   ;;  %v3557_v19 = vld [vmem:[%s5419_s23 + $0x80] ss:$8 sps:$4 sm:$0xff]   ;;  %v3560_v21 = vld [vmem:[%s5419_s23 + $0x90] ss:$8 sps:$4 sm:$0xff]   ;;  %v3097_v36 = vcombine.low %v63_v13, %v63_v13 }
   0xf   :  { %699 = vmatprep.subr.bf16.mxu0 %v3537_v4  ;;  %v3561_v22 = vld [vmem:[%s5419_s23 + $0xa4] ss:$8 sps:$4 sm:$0xff]   ;;  %v3563_v23 = vld [vmem:[%s5419_s23 + $0xa0] ss:$8 sps:$4 sm:$0xff]   ;;  %v3564_v24 = vld [vmem:[%s5419_s23 + $0xb4] ss:$8 sps:$4 sm:$0xff]  }
  0x10   :  { %727 = vmatprep.mubr.bf16.mxu0 %v3098_v14  ;;  %v3566_v25 = vld [vmem:[%s5419_s23 + $0xb0] ss:$8 sps:$4 sm:$0xff]   ;;  %v3567_v26 = vld [vmem:[%s5419_s23 + $0xc4] ss:$8 sps:$4 sm:$0xff]   ;;  %v3569_v27 = vld [vmem:[%s5419_s23 + $0xc0] ss:$8 sps:$4 sm:$0xff]  }
  0x11   :  { %v3570_v28 = vld [vmem:[%s5419_s23 + $0xd4] ss:$8 sps:$4 sm:$0xff]   ;;  %v3572_v29 = vld [vmem:[%s5419_s23 + $0xd0] ss:$8 sps:$4 sm:$0xff]   ;;  %v3573_v30 = vld [vmem:[%s5419_s23 + $0xe4] ss:$8 sps:$4 sm:$0xff]  }
  0x12   :  { %700 = vmatpush1.bf16.msra.mxu0 %v3539_v5  ;;  %v3575_v31 = vld [vmem:[%s5419_s23 + $0xe0] ss:$8 sps:$4 sm:$0xff]   ;;  %v3576_v32 = vld [vmem:[%s5419_s23 + $0xf4] ss:$8 sps:$4 sm:$0xff]   ;;  %v3578_v33 = vld [vmem:[%s5419_s23 + $0xf0] ss:$8 sps:$4 sm:$0xff]  }
  0x13   :  { %701 = vmatprep.subr.bf16.mxu0 %v3540_v6  ;;  %v3584_v34 = vld [vmem:[%s5419_s23 + $0x104] ss:$8 sps:$4 sm:$0xff]   ;;  %v3582_v37 = vld [vmem:[%s5419_s23 + $0x100] ss:$8 sps:$4 sm:$0xff]   ;;  %v3587_v39 = vld [vmem:[%s5419_s23 + $0x114] ss:$8 sps:$4 sm:$0xff]  }
  0x14   :  { %v4299_v35 = vld [vmem:[%s5420_s0 + $0x8] sm:$0xff]  ;;  %v3585_v40 = vld [vmem:[%s5419_s23 + $0x110] ss:$8 sps:$4 sm:$0xff]   ;;  %v3593_v43 = vld [vmem:[%s5419_s23 + $0x134] ss:$8 sps:$4 sm:$0xff]  }
  0x15   :  { %v3100_v38 = vcombine.high %v4299_v35, %v4299_v35  ;;  %v3590_v41 = vld [vmem:[%s5419_s23 + $0x124] ss:$8 sps:$4 sm:$0xff]   ;;  %v3588_v42 = vld [vmem:[%s5419_s23 + $0x120] ss:$8 sps:$4 sm:$0xff]   ;;  %v3591_v44 = vld [vmem:[%s5419_s23 + $0x130] ss:$8 sps:$4 sm:$0xff]  }
  0x16   :  { %702 = vmatpush1.bf16.msra.mxu0 %v3542_v7  ;;  %v3596_v45 = vld [vmem:[%s5419_s23 + $0x144] ss:$8 sps:$4 sm:$0xff]   ;;  %v3594_v46 = vld [vmem:[%s5419_s23 + $0x140] ss:$8 sps:$4 sm:$0xff]   ;;  %v3599_v47 = vld [vmem:[%s5419_s23 + $0x154] ss:$8 sps:$4 sm:$0xff]  }
  0x17   :  { %703 = vmatprep.subr.bf16.mxu0 %v3543_v8  ;;  %v3685_v48 = vld [vmem:[%s5421_s21 + $0x4] ss:$8 sps:$4 sm:$0xff]   ;;  %v3687_v49 = vld [vmem:[%s5421_s21] ss:$8 sps:$4 sm:$0xff]   ;;  %v3688_v50 = vld [vmem:[%s5421_s21 + $0x14] ss:$8 sps:$4 sm:$0xff]  }
  0x18   :  { %1067 = vmatprep.subr.bf16.mxu1 %v3685_v48  ;;  %v3597_v51 = vld [vmem:[%s5419_s23 + $0x150] ss:$8 sps:$4 sm:$0xff]   ;;  %v3691_v53 = vld [vmem:[%s5421_s21 + $0x24] ss:$8 sps:$4 sm:$0xff]   ;;  %v3600_v55 = vld [vmem:[%s5419_s23 + $0x160] ss:$8 sps:$4 sm:$0xff]  }
  0x19   :  { %1068 = vmatpush1.bf16.msra.mxu1 %v3687_v49  ;;  %v3690_v52 = vld [vmem:[%s5421_s21 + $0x10] ss:$8 sps:$4 sm:$0xff]   ;;  %v3602_v54 = vld [vmem:[%s5419_s23 + $0x164] ss:$8 sps:$4 sm:$0xff]   ;;  %v3693_v56 = vld [vmem:[%s5421_s21 + $0x20] ss:$8 sps:$4 sm:$0xff]  }
  0x1a   :  { %704 = vmatpush1.bf16.msra.mxu0 %v3545_v9  ;;  %1069 = vmatprep.subr.bf16.mxu1 %v3688_v50  ;;  %v3694_v57 = vld [vmem:[%s5421_s21 + $0x34] ss:$8 sps:$4 sm:$0xff]   ;;  %v3603_v59 = vld [vmem:[%s5419_s23 + $0x170] ss:$8 sps:$4 sm:$0xff]   ;;  %v3697_v61 = vld [vmem:[%s5421_s21 + $0x44] ss:$8 sps:$4 sm:$0xff]  }
  0x1b   :  { %705 = vmatprep.subr.bf16.mxu0 %v3546_v10  ;;  %v3605_v58 = vld [vmem:[%s5419_s23 + $0x174] ss:$8 sps:$4 sm:$0xff]   ;;  %v3696_v60 = vld [vmem:[%s5421_s21 + $0x30] ss:$8 sps:$4 sm:$0xff]   ;;  %v3608_v62 = vld [vmem:[%s5419_s23 + $0x184] ss:$8 sps:$4 sm:$0xff]  }
  0x1c   :  { %v3606_v63 = vld [vmem:[%s5419_s23 + $0x180] ss:$8 sps:$4 sm:$0xff]   ;;  %v3700_v1 = vld [vmem:[%s5421_s21 + $0x54] ss:$8 sps:$4 sm:$0xff]   ;;  %v3702_v3 = vld [vmem:[%s5421_s21 + $0x50] ss:$8 sps:$4 sm:$0xff]  }
  0x1d   :  { %1070 = vmatpush1.bf16.msra.mxu1 %v3690_v52  ;;  %v3699_v0 = vld [vmem:[%s5421_s21 + $0x40] ss:$8 sps:$4 sm:$0xff]   ;;  %v3611_v2 = vld [vmem:[%s5419_s23 + $0x194] ss:$8 sps:$4 sm:$0xff]   ;;  %v3609_v4 = vld [vmem:[%s5419_s23 + $0x190] ss:$8 sps:$4 sm:$0xff]  }
  0x1e   :  { %706 = vmatpush1.bf16.msra.mxu0 %v3548_v11  ;;  %1071 = vmatprep.subr.bf16.mxu1 %v3691_v53  ;;  %v3703_v5 = vld [vmem:[%s5421_s21 + $0x64] ss:$8 sps:$4 sm:$0xff]   ;;  %v3705_v7 = vld [vmem:[%s5421_s21 + $0x60] ss:$8 sps:$4 sm:$0xff]   ;;  %v3706_v9 = vld [vmem:[%s5421_s21 + $0x74] ss:$8 sps:$4 sm:$0xff]  }
  0x1f   :  { %707 = vmatprep.subr.bf16.mxu0 %v3549_v12  ;;  %v3614_v6 = vld [vmem:[%s5419_s23 + $0x1a4] ss:$8 sps:$4 sm:$0xff]   ;;  %v3612_v8 = vld [vmem:[%s5419_s23 + $0x1a0] ss:$8 sps:$4 sm:$0xff]   ;;  %v3617_v10 = vld [vmem:[%s5419_s23 + $0x1b4] ss:$8 sps:$4 sm:$0xff]  }
  0x20   :  { %v3708_v11 = vld [vmem:[%s5421_s21 + $0x70] ss:$8 sps:$4 sm:$0xff]   ;;  %v3709_v13 = vld [vmem:[%s5421_s21 + $0x84] ss:$8 sps:$4 sm:$0xff]   ;;  %v3650_v49 = vld [vmem:[%s5419_s23 + $0x260] ss:$8 sps:$4 sm:$0xff]  }
  0x21   :  { %1072 = vmatpush1.bf16.msra.mxu1 %v3693_v56  ;;  %v3615_v12 = vld [vmem:[%s5419_s23 + $0x1b0] ss:$8 sps:$4 sm:$0xff]   ;;  %v3620_v14 = vld [vmem:[%s5419_s23 + $0x1c4] ss:$8 sps:$4 sm:$0xff]   ;;  %v3655_v50 = vld [vmem:[%s5419_s23 + $0x274] ss:$8 sps:$4 sm:$0xff]  }
  0x22   :  { %708 = vmatpush1.bf16.msra.mxu0 %v3551_v15  ;;  %1073 = vmatprep.subr.bf16.mxu1 %v3694_v57  ;;  %v3711_v15 = vld [vmem:[%s5421_s21 + $0x80] ss:$8 sps:$4 sm:$0xff]   ;;  %v3652_v48 = vld [vmem:[%s5419_s23 + $0x264] ss:$8 sps:$4 sm:$0xff]  }
  0x23   :  { %709 = vmatprep.subr.bf16.mxu0 %v3552_v16  ;;  %v3618_v16 = vld [vmem:[%s5419_s23 + $0x1c0] ss:$8 sps:$4 sm:$0xff]   ;;  %v3658_v52 = vld [vmem:[%s5419_s23 + $0x284] ss:$8 sps:$4 sm:$0xff]  }
  0x24   :  { %v3656_v53 = vld [vmem:[%s5419_s23 + $0x280] ss:$8 sps:$4 sm:$0xff]   ;;  %v3664_v56 = vld [vmem:[%s5419_s23 + $0x2a4] ss:$8 sps:$4 sm:$0xff]  }
  0x25   :  { %1074 = vmatpush1.bf16.msra.mxu1 %v3696_v60  ;;  %v3662_v57 = vld [vmem:[%s5419_s23 + $0x2a0] ss:$8 sps:$4 sm:$0xff]   ;;  %v3670_v60 = vld [vmem:[%s5419_s23 + $0x2c4] ss:$8 sps:$4 sm:$0xff]  }
  0x26   :  { %710 = vmatpush1.bf16.msra.mxu0 %v3554_v17  ;;  %1075 = vmatprep.subr.bf16.mxu1 %v3697_v61  ;;  %v3712_v17 = vld [vmem:[%s5421_s21 + $0x94] ss:$8 sps:$4 sm:$0xff]   ;;  %v3668_v61 = vld [vmem:[%s5419_s23 + $0x2c0] ss:$8 sps:$4 sm:$0xff]  }
  0x27   :  { %711 = vmatprep.subr.bf16.mxu0 %v3555_v18  ;;  %v3623_v18 = vld [vmem:[%s5419_s23 + $0x1d4] ss:$8 sps:$4 sm:$0xff]  }
  0x29   :  { %1076 = vmatpush1.bf16.msra.mxu1 %v3699_v0  ;;  %v3676_v0 = vld [vmem:[%s5419_s23 + $0x2e4] ss:$8 sps:$4 sm:$0xff]  }
  0x2a   :  { %712 = vmatpush1.bf16.msra.mxu0 %v3557_v19  ;;  %1077 = vmatprep.subr.bf16.mxu1 %v3700_v1  ;;  %v3714_v19 = vld [vmem:[%s5421_s21 + $0x90] ss:$8 sps:$4 sm:$0xff]   ;;  %v3674_v1 = vld [vmem:[%s5419_s23 + $0x2e0] ss:$8 sps:$4 sm:$0xff]  }
  0x2b   :  { %713 = vmatprep.subr.bf16.mxu0 %v3558_v20  ;;  %v3621_v20 = vld [vmem:[%s5419_s23 + $0x1d0] ss:$8 sps:$4 sm:$0xff]  }
  0x2d   :  { %1078 = vmatpush1.bf16.msra.mxu1 %v3702_v3  ;;  %v3677_v3 = vld [vmem:[%s5419_s23 + $0x2f0] ss:$8 sps:$4 sm:$0xff]  }
  0x2e   :  { %714 = vmatpush1.bf16.msra.mxu0 %v3560_v21  ;;  %1079 = vmatprep.subr.bf16.mxu1 %v3703_v5  ;;  %v3715_v21 = vld [vmem:[%s5421_s21 + $0xa4] ss:$8 sps:$4 sm:$0xff]  }
  0x2f   :  { %715 = vmatprep.subr.bf16.mxu0 %v3561_v22  ;;  %v3626_v22 = vld [vmem:[%s5419_s23 + $0x1e4] ss:$8 sps:$4 sm:$0xff]  }
  0x31   :  { %1080 = vmatpush1.bf16.msra.mxu1 %v3705_v7  ;;  %v4086_v7 = vmov 0  }
  0x32   :  { %716 = vmatpush1.bf16.msra.mxu0 %v3563_v23  ;;  %1081 = vmatprep.subr.bf16.mxu1 %v3706_v9  ;;  %v3717_v23 = vld [vmem:[%s5421_s21 + $0xa0] ss:$8 sps:$4 sm:$0xff]   ;;  %v3727_v9 = vld [vmem:[%s5421_s21 + $0xe4] ss:$8 sps:$4 sm:$0xff]  }
  0x33   :  { %717 = vmatprep.subr.bf16.mxu0 %v3564_v24  ;;  %v3624_v24 = vld [vmem:[%s5419_s23 + $0x1e0] ss:$8 sps:$4 sm:$0xff]  }
  0x35   :  { %1082 = vmatpush1.bf16.msra.mxu1 %v3708_v11  ;;  %v3730_v11 = vld [vmem:[%s5421_s21 + $0xf4] ss:$8 sps:$4 sm:$0xff]  }
  0x36   :  { %718 = vmatpush1.bf16.msra.mxu0 %v3566_v25  ;;  %1083 = vmatprep.subr.bf16.mxu1 %v3709_v13  ;;  %v3718_v25 = vld [vmem:[%s5421_s21 + $0xb4] ss:$8 sps:$4 sm:$0xff]   ;;  %v3735_v13 = vld [vmem:[%s5422_s3 + $0x4] ss:$8 sps:$4 sm:$0xff]  }
  0x37   :  { %719 = vmatprep.subr.bf16.mxu0 %v3567_v26  ;;  %v3629_v26 = vld [vmem:[%s5419_s23 + $0x1f4] ss:$8 sps:$4 sm:$0xff]  }
  0x39   :  { %1084 = vmatpush1.bf16.msra.mxu1 %v3711_v15 }
  0x3a   :  { %720 = vmatpush1.bf16.msra.mxu0 %v3569_v27  ;;  %1085 = vmatprep.subr.bf16.mxu1 %v3712_v17  ;;  %v3720_v27 = vld [vmem:[%s5421_s21 + $0xb0] ss:$8 sps:$4 sm:$0xff]   ;;  %v165_v17 = vld [vmem:[%s5423_s2] sm:$0x3] }
  0x3b   :  { %721 = vmatprep.subr.bf16.mxu0 %v3570_v28  ;;  %v3627_v28 = vld [vmem:[%s5419_s23 + $0x1f0] ss:$8 sps:$4 sm:$0xff]  }
  0x3d   :  { %1086 = vmatpush1.bf16.msra.mxu1 %v3714_v19 }
  0x3e   :  { %722 = vmatpush1.bf16.msra.mxu0 %v3572_v29  ;;  %1087 = vmatprep.subr.bf16.mxu1 %v3715_v21  ;;  %v3721_v29 = vld [vmem:[%s5421_s21 + $0xc4] ss:$8 sps:$4 sm:$0xff]  }
  0x3f   :  { %723 = vmatprep.subr.bf16.mxu0 %v3573_v30  ;;  %v3634_v30 = vld [vmem:[%s5419_s23 + $0x204] ss:$8 sps:$4 sm:$0xff]  }
  0x41   :  { %1088 = vmatpush1.bf16.msra.mxu1 %v3717_v23 }
  0x42   :  { %724 = vmatpush1.bf16.msra.mxu0 %v3575_v31  ;;  %1089 = vmatprep.subr.bf16.mxu1 %v3718_v25  ;;  %v4477_v31 = vld [vmem:[%s5420_s0 + $0x10] sm:$0xff] }
  0x43   :  { %725 = vmatprep.subr.bf16.mxu0 %v3576_v32  ;;  %v3099_v32 = vcombine.low %v4299_v35, %v4299_v35  ;;  %v3724_v35 = vld [vmem:[%s5421_s21 + $0xd4] ss:$8 sps:$4 sm:$0xff]   ;;  %v3101_v5 = vcombine.low %v4477_v31, %v4477_v31 }
  0x45   :  { %1090 = vmatpush1.bf16.msra.mxu1 %v3720_v27 }
  0x46   :  { %726 = vmatpush1.bf16.msra.mxu0 %v3578_v33  ;;  %v3723_v33 = vld [vmem:[%s5421_s21 + $0xc0] ss:$8 sps:$4 sm:$0xff]   ;;  %1091 = vmatprep.subr.bf16.mxu1 %v3721_v29 }
  0x47   :  { %736 = vmatprep.subr.bf16.mxu0 %v3584_v34  ;;  %v3632_v34 = vld [vmem:[%s5419_s23 + $0x200] ss:$8 sps:$4 sm:$0xff]  }
  0x49   :  { %728 = vmatmul.mubr.bf16.vlgmr.msra.gmra.mrb[0].mxu0 %v3097_v36  ;;  %v3102_v36 = vcombine.high %v4477_v31, %v4477_v31  ;;  %1092 = vmatpush1.bf16.msra.mxu1 %v3723_v33  ;;  %v3736_v33 = vld [vmem:[%s5422_s3 + $0x10] ss:$8 sps:$4 sm:$0xff]  }
  0x4a   :  { %737 = vmatpush1.bf16.msra.mxu0 %v3582_v37  ;;  %768 = vmatprep.mubr.bf16.mxu0 %v3100_v38  ;;  %v3637_v37 = vld [vmem:[%s5419_s23 + $0x214] ss:$8 sps:$4 sm:$0xff]   ;;  %v3726_v38 = vld [vmem:[%s5421_s21 + $0xd0] ss:$8 sps:$4 sm:$0xff]  }
  0x4b   :  { %738 = vmatprep.subr.bf16.mxu0 %v3587_v39  ;;  %v3635_v39 = vld [vmem:[%s5419_s23 + $0x210] ss:$8 sps:$4 sm:$0xff]   ;;  %1093 = vmatprep.subr.bf16.mxu1 %v3724_v35 }
  0x4c   :  { %v3742_v35 = vld [vmem:[%s5422_s3 + $0x30] ss:$8 sps:$4 sm:$0xff]  }
  0x4d   :  { %1094 = vmatpush1.bf16.msra.mxu1 %v3726_v38  ;;  %v3747_v38 = vld [vmem:[%s5422_s3 + $0x44] ss:$8 sps:$4 sm:$0xff]  }
  0x4e   :  { %739 = vmatpush1.bf16.msra.mxu0 %v3585_v40  ;;  %v3640_v40 = vld [vmem:[%s5419_s23 + $0x224] ss:$8 sps:$4 sm:$0xff]   ;;  %1095 = vmatprep.subr.bf16.mxu1 %v3727_v9 }
  0x4f   :  { %740 = vmatprep.subr.bf16.mxu0 %v3590_v41  ;;  %v3638_v41 = vld [vmem:[%s5419_s23 + $0x220] ss:$8 sps:$4 sm:$0xff]  }
  0x52   :  { %741 = vmatpush1.bf16.msra.mxu0 %v3588_v42  ;;  %v3643_v42 = vld [vmem:[%s5419_s23 + $0x234] ss:$8 sps:$4 sm:$0xff]  }
  0x53   :  { %742 = vmatprep.subr.bf16.mxu0 %v3593_v43  ;;  %v3641_v43 = vld [vmem:[%s5419_s23 + $0x230] ss:$8 sps:$4 sm:$0xff]  }
  0x56   :  { %743 = vmatpush1.bf16.msra.mxu0 %v3591_v44  ;;  %v3646_v44 = vld [vmem:[%s5419_s23 + $0x244] ss:$8 sps:$4 sm:$0xff]  }
  0x57   :  { %744 = vmatprep.subr.bf16.mxu0 %v3596_v45  ;;  %v3644_v45 = vld [vmem:[%s5419_s23 + $0x240] ss:$8 sps:$4 sm:$0xff]  }
  0x5a   :  { %745 = vmatpush1.bf16.msra.mxu0 %v3594_v46  ;;  %v3649_v46 = vld [vmem:[%s5419_s23 + $0x254] ss:$8 sps:$4 sm:$0xff]  }
  0x5b   :  { %746 = vmatprep.subr.bf16.mxu0 %v3599_v47  ;;  %v3647_v47 = vld [vmem:[%s5419_s23 + $0x250] ss:$8 sps:$4 sm:$0xff]  }
  0x5e   :  { %747 = vmatpush1.bf16.msra.mxu0 %v3597_v51  ;;  %v3653_v51 = vld [vmem:[%s5419_s23 + $0x270] ss:$8 sps:$4 sm:$0xff]  }
  0x5f   :  { %748 = vmatprep.subr.bf16.mxu0 %v3602_v54  ;;  %v3661_v54 = vld [vmem:[%s5419_s23 + $0x294] ss:$8 sps:$4 sm:$0xff]  }
  0x62   :  { %749 = vmatpush1.bf16.msra.mxu0 %v3600_v55  ;;  %v3659_v55 = vld [vmem:[%s5419_s23 + $0x290] ss:$8 sps:$4 sm:$0xff]  }
  0x63   :  { %750 = vmatprep.subr.bf16.mxu0 %v3605_v58  ;;  %v3667_v58 = vld [vmem:[%s5419_s23 + $0x2b4] ss:$8 sps:$4 sm:$0xff]  }
  0x66   :  { %751 = vmatpush1.bf16.msra.mxu0 %v3603_v59  ;;  %v3665_v59 = vld [vmem:[%s5419_s23 + $0x2b0] ss:$8 sps:$4 sm:$0xff]  }
  0x67   :  { %752 = vmatprep.subr.bf16.mxu0 %v3608_v62  ;;  %v3673_v62 = vld [vmem:[%s5419_s23 + $0x2d4] ss:$8 sps:$4 sm:$0xff]  }
  0x6a   :  { %753 = vmatpush1.bf16.msra.mxu0 %v3606_v63  ;;  %v3671_v63 = vld [vmem:[%s5419_s23 + $0x2d0] ss:$8 sps:$4 sm:$0xff]  }
  0x6b   :  { %754 = vmatprep.subr.bf16.mxu0 %v3611_v2  ;;  %v3679_v2 = vld [vmem:[%s5419_s23 + $0x2f4] ss:$8 sps:$4 sm:$0xff]  }
  0x6e   :  { %755 = vmatpush1.bf16.msra.mxu0 %v3609_v4  ;;  %v3684_v4 = vld [vmem:[%s5419_s23 + $0x304] ss:$8 sps:$4 sm:$0xff]  }
  0x6f   :  { %756 = vmatprep.subr.bf16.mxu0 %v3614_v6  ;;  %v3682_v6 = vld [vmem:[%s5419_s23 + $0x300] ss:$8 sps:$4 sm:$0xff]  }
  0x72   :  { %757 = vmatpush1.bf16.msra.mxu0 %v3612_v8  ;;  %v3581_v8 = vld [vmem:[%s5420_s0 + $0x18] ss:$0 sps:$4 sm:$0xff]  }
  0x73   :  { %758 = vmatprep.subr.bf16.mxu0 %v3617_v10  ;;  %v3729_v10 = vld [vmem:[%s5421_s21 + $0xe0] ss:$8 sps:$4 sm:$0xff]  }
  0x74   :  { %1096 = vmatpush1.bf16.msra.mxu1 %v3729_v10 }
  0x75   :  { %1097 = vmatprep.subr.bf16.mxu1 %v3730_v11 }
  0x76   :  { %759 = vmatpush1.bf16.msra.mxu0 %v3615_v12  ;;  %v3732_v12 = vld [vmem:[%s5421_s21 + $0xf0] ss:$8 sps:$4 sm:$0xff]  }
  0x77   :  { %760 = vmatprep.subr.bf16.mxu0 %v3620_v14  ;;  %v167_v14 = vlaneseq }
  0x78   :  { %1098 = vmatpush1.bf16.msra.mxu1 %v3732_v12  ;;  %v3782_v12 = vld [vmem:[%s5394_s8] sm:$0xff]  }
  0x79   :  { %1316 = vmatprep.subr.bf16.mxu1 %v3735_v13  ;;  %v4613_v15 = vshrl.u32 %v167_v14, 7  ;;  %v3783_v14 = vld [vmem:[%s5394_s8 + $0x48] sm:$0xff]  }
  0x7a   :  { %761 = vmatpush1.bf16.msra.mxu0 %v3618_v16 }
  0x7b   :  { %762 = vmatprep.subr.bf16.mxu0 %v3623_v18  ;;  %v4616_v16 = vsub.s32 0, %v4613_v15  ;;  %v4622_v18 = vsub.s32 1, %v4613_v15 }
  0x7d   :  { %v170_v19 = vrot.slane %v165_v17, %v4616_v16 }
  0x7e   :  { %763 = vmatpush1.bf16.msra.mxu0 %v3621_v20  ;;  %v174_v20 = vrot.slane %v165_v17, %v4622_v18  ;;  %v3784_v17 = vld [vmem:[%s5394_s8 + $0x8] sm:$0xff]  }
  0x7f   :  { %764 = vmatprep.subr.bf16.mxu0 %v3626_v22 }
  0x82   :  { %765 = vmatpush1.bf16.msra.mxu0 %v3624_v24 }
  0x83   :  { %766 = vmatprep.subr.bf16.mxu0 %v3629_v26 }
  0x86   :  { %767 = vmatpush1.bf16.msra.mxu0 %v3627_v28 }
  0x87   :  { %777 = vmatprep.subr.bf16.mxu0 %v3634_v30  ;;  %v3733_v30 = vld [vmem:[%s5422_s3] ss:$8 sps:$4 sm:$0xff]  }
  0x89   :  { %769 = vmatmul.mubr.bf16.vlgmr.msra.gmra.mrb[0].mxu0 %v3099_v32  ;;  %v3738_v32 = vld [vmem:[%s5422_s3 + $0x14] ss:$8 sps:$4 sm:$0xff]  }
  0x8a   :  { %778 = vmatpush1.bf16.msra.mxu0 %v3632_v34  ;;  %809 = vmatprep.mubr.bf16.mxu0 %v3102_v36  ;;  %v3741_v34 = vld [vmem:[%s5422_s3 + $0x24] ss:$8 sps:$4 sm:$0xff]   ;;  %v3739_v36 = vld [vmem:[%s5422_s3 + $0x20] ss:$8 sps:$4 sm:$0xff]  }
  0x8b   :  { %779 = vmatprep.subr.bf16.mxu0 %v3637_v37  ;;  %v3744_v37 = vld [vmem:[%s5422_s3 + $0x34] ss:$8 sps:$4 sm:$0xff]  }
  0x8e   :  { %780 = vmatpush1.bf16.msra.mxu0 %v3635_v39  ;;  %v3745_v39 = vld [vmem:[%s5422_s3 + $0x40] ss:$8 sps:$4 sm:$0xff]  }
  0x8f   :  { %781 = vmatprep.subr.bf16.mxu0 %v3640_v40  ;;  %v3750_v40 = vld [vmem:[%s5422_s3 + $0x54] ss:$8 sps:$4 sm:$0xff]  }
  0x92   :  { %782 = vmatpush1.bf16.msra.mxu0 %v3638_v41  ;;  %v3748_v41 = vld [vmem:[%s5422_s3 + $0x50] ss:$8 sps:$4 sm:$0xff]  }
  0x93   :  { %783 = vmatprep.subr.bf16.mxu0 %v3643_v42  ;;  %v3753_v42 = vld [vmem:[%s5422_s3 + $0x64] ss:$8 sps:$4 sm:$0xff]  }
  0x96   :  { %784 = vmatpush1.bf16.msra.mxu0 %v3641_v43  ;;  %v3751_v43 = vld [vmem:[%s5422_s3 + $0x60] ss:$8 sps:$4 sm:$0xff]  }
  0x97   :  { %785 = vmatprep.subr.bf16.mxu0 %v3646_v44  ;;  %v3756_v44 = vld [vmem:[%s5422_s3 + $0x74] ss:$8 sps:$4 sm:$0xff]  }
  0x9a   :  { %786 = vmatpush1.bf16.msra.mxu0 %v3644_v45  ;;  %v3754_v45 = vld [vmem:[%s5422_s3 + $0x70] ss:$8 sps:$4 sm:$0xff]  }
  0x9b   :  { %787 = vmatprep.subr.bf16.mxu0 %v3649_v46  ;;  %v3759_v46 = vld [vmem:[%s5422_s3 + $0x84] ss:$8 sps:$4 sm:$0xff]  }
  0x9e   :  { %788 = vmatpush1.bf16.msra.mxu0 %v3647_v47  ;;  %v3757_v47 = vld [vmem:[%s5422_s3 + $0x80] ss:$8 sps:$4 sm:$0xff]  }
  0x9f   :  { %789 = vmatprep.subr.bf16.mxu0 %v3652_v48  ;;  %v3762_v48 = vld [vmem:[%s5422_s3 + $0x94] ss:$8 sps:$4 sm:$0xff]  }
  0xa2   :  { %790 = vmatpush1.bf16.msra.mxu0 %v3650_v49  ;;  %v3760_v49 = vld [vmem:[%s5422_s3 + $0x90] ss:$8 sps:$4 sm:$0xff]  }
  0xa3   :  { %791 = vmatprep.subr.bf16.mxu0 %v3655_v50  ;;  %v3765_v50 = vld [vmem:[%s5422_s3 + $0xa4] ss:$8 sps:$4 sm:$0xff]  }
  0xa6   :  { %792 = vmatpush1.bf16.msra.mxu0 %v3653_v51  ;;  %v3763_v51 = vld [vmem:[%s5422_s3 + $0xa0] ss:$8 sps:$4 sm:$0xff]  }
  0xa7   :  { %793 = vmatprep.subr.bf16.mxu0 %v3658_v52  ;;  %v3768_v52 = vld [vmem:[%s5422_s3 + $0xb4] ss:$8 sps:$4 sm:$0xff]  }
  0xaa   :  { %794 = vmatpush1.bf16.msra.mxu0 %v3656_v53  ;;  %v3766_v53 = vld [vmem:[%s5422_s3 + $0xb0] ss:$8 sps:$4 sm:$0xff]  }
  0xab   :  { %795 = vmatprep.subr.bf16.mxu0 %v3661_v54  ;;  %v3771_v54 = vld [vmem:[%s5422_s3 + $0xc4] ss:$8 sps:$4 sm:$0xff]  }
  0xae   :  { %796 = vmatpush1.bf16.msra.mxu0 %v3659_v55  ;;  %v3769_v55 = vld [vmem:[%s5422_s3 + $0xc0] ss:$8 sps:$4 sm:$0xff]  }
  0xaf   :  { %797 = vmatprep.subr.bf16.mxu0 %v3664_v56  ;;  %v3774_v56 = vld [vmem:[%s5422_s3 + $0xd4] ss:$8 sps:$4 sm:$0xff]  }
  0xb2   :  { %798 = vmatpush1.bf16.msra.mxu0 %v3662_v57  ;;  %v3772_v57 = vld [vmem:[%s5422_s3 + $0xd0] ss:$8 sps:$4 sm:$0xff]  }
  0xb3   :  { %799 = vmatprep.subr.bf16.mxu0 %v3667_v58  ;;  %v3777_v58 = vld [vmem:[%s5422_s3 + $0xe4] ss:$8 sps:$4 sm:$0xff]  }
  0xb6   :  { %800 = vmatpush1.bf16.msra.mxu0 %v3665_v59  ;;  %v3775_v59 = vld [vmem:[%s5422_s3 + $0xe0] ss:$8 sps:$4 sm:$0xff]  }
  0xb7   :  { %801 = vmatprep.subr.bf16.mxu0 %v3670_v60  ;;  %v3780_v60 = vld [vmem:[%s5422_s3 + $0xf4] ss:$8 sps:$4 sm:$0xff]  }
  0xba   :  { %802 = vmatpush1.bf16.msra.mxu0 %v3668_v61  ;;  %v3778_v61 = vld [vmem:[%s5422_s3 + $0xf0] ss:$8 sps:$4 sm:$0xff]  }
  0xbb   :  { %803 = vmatprep.subr.bf16.mxu0 %v3673_v62  ;;  %v3781_v62 = vld [vmem:[%s5394_s8 + $0x40] sm:$0xff]  }
  0xbe   :  { %804 = vmatpush1.bf16.msra.mxu0 %v3671_v63  ;;  %v895_v63 = vld [vmem:[%s5395_s5] sm:$0x3] }
  0xbf   :  { %805 = vmatprep.subr.bf16.mxu0 %v3676_v0  ;;  %v900_v0 = vrot.slane %v895_v63, %v4616_v16 }
  0xc2   :  { %806 = vmatpush1.bf16.msra.mxu0 %v3674_v1  ;;  %v904_v1 = vrot.slane %v895_v63, %v4622_v18 }
  0xc3   :  { %807 = vmatprep.subr.bf16.mxu0 %v3679_v2 }
  0xc6   :  { %808 = vmatpush1.bf16.msra.mxu0 %v3677_v3 }
  0xc7   :  { %818 = vmatprep.subr.bf16.mxu0 %v3684_v4 }
  0xc9   :  { %810 = vmatmul.mubr.bf16.vlgmr.msra.gmra.mrb[0].mxu0 %v3101_v5 }
  0xca   :  { %819 = vmatpush1.bf16.msra.mxu0 %v3682_v6  ;;  %850 = vmatprep.mubr.bf16.mxu0 %v4086_v7 }
  0xd5   :  { %3202 = vmatmul.mubr.msk.bf16.vlgmr.msra.gmra.mrb[0].mxu0 %vm691_vm0, %v3581_v8 }
 0x1a8   :  { %v852_v21 = vpop.f32.mrb[0].mxu0 }
 0x1a9   :  { %v3514_v22 = vadd.f32 %v852_v21, %v170_v19  ;;  %v854_v23 = vpop.f32.mrb[1].mxu0  ;;  %v3785_v19 = vld [vmem:[%s5394_s8 + $0x50] sm:$0xff]   ;;  %v3787_v21 = vld [vmem:[%s5394_s8 + $0x58] sm:$0xff]  }
 0x1aa   :  { %v3515_v24 = vadd.f32 %v854_v23, %v174_v20  ;;  %v856_v25 = vpop.f32.mrb[2].mxu0  ;;  %v3786_v20 = vld [vmem:[%s5394_s8 + $0x10] sm:$0xff]   ;;  %v3789_v23 = vld [vmem:[%s5394_s8 + $0x60] sm:$0xff]  }
 0x1ab   :  { %v859_v26 = vmax.f32 %v3514_v22, 0.0  ;;  %v857_v27 = vpop.f32.mrb[3].mxu0  ;;  %v3788_v22 = vld [vmem:[%s5394_s8 + $0x18] sm:$0xff]   ;;  %v3791_v25 = vld [vmem:[%s5394_s8 + $0x68] sm:$0xff]  }
 0x1ac   :  { %v860_v28 = vmax.f32 %v3515_v24, 0.0  ;;  %v3790_v24 = vld [vmem:[%s5394_s8 + $0x20] sm:$0xff]   ;;  %v3793_v27 = vld [vmem:[%s5394_s8 + $0x70] sm:$0xff]  }
 0x1ad   :  { %v861_v31 = vpack.c.bf16 %v859_v26, %v859_v26  ;;  %v3792_v26 = vld [vmem:[%s5394_s8 + $0x28] sm:$0xff]  }
 0x1ae   :  { %v862_v29 = vpack.c.bf16 %v860_v28, %v860_v28  ;;  %v3794_v28 = vld [vmem:[%s5394_s8 + $0x30] sm:$0xff]  }
 0x1b0   :  { %1099 = vmatprep.mubr.bf16.mxu1 %v862_v29  ;;  %v3795_v29 = vld [vmem:[%s5394_s8 + $0x78] sm:$0xff]  }
 0x1b1   :  { %1100 = vmatmul.mubr.bf16.vlgmr.msra.gmra.mrb[0].mxu1 %v861_v31  ;;  %v1144_v31 = vld [vmem:[%s5396_s7] sm:$0x3] }
 0x1b2   :  { %1317 = vmatpush1.bf16.msra.mxu1 %v3733_v30  ;;  %v3796_v30 = vld [vmem:[%s5394_s8 + $0x38] sm:$0xff]  }
 0x1b3   :  { %1318 = vmatprep.subr.bf16.mxu1 %v3738_v32  ;;  %v1149_v32 = vrot.slane %v1144_v31, %v4616_v16 }
 0x1b6   :  { %1319 = vmatpush1.bf16.msra.mxu1 %v3736_v33  ;;  %v1153_v33 = vrot.slane %v1144_v31, %v4622_v18  ;;  %v3836_v31 = vld [vmem:[%s5400_s12 + $0xc0] ss:$8 sps:$4 sm:$0xff]  }
 0x1b7   :  { %1320 = vmatprep.subr.bf16.mxu1 %v3741_v34 }
 0x1ba   :  { %1321 = vmatpush1.bf16.msra.mxu1 %v3739_v36 }
 0x1bb   :  { %1322 = vmatprep.subr.bf16.mxu1 %v3744_v37 }
 0x1be   :  { %1323 = vmatpush1.bf16.msra.mxu1 %v3742_v35 }
 0x1bf   :  { %1324 = vmatprep.subr.bf16.mxu1 %v3747_v38 }
 0x1c2   :  { %1325 = vmatpush1.bf16.msra.mxu1 %v3745_v39 }
 0x1c3   :  { %1326 = vmatprep.subr.bf16.mxu1 %v3750_v40 }
 0x1c6   :  { %1327 = vmatpush1.bf16.msra.mxu1 %v3748_v41 }
 0x1c7   :  { %1328 = vmatprep.subr.bf16.mxu1 %v3753_v42 }
 0x1ca   :  { %1329 = vmatpush1.bf16.msra.mxu1 %v3751_v43 }
 0x1cb   :  { %1330 = vmatprep.subr.bf16.mxu1 %v3756_v44  ;;  %v3797_v44 = vld [vmem:[%s5397_s10] ss:$8 sps:$4 sm:$0xff]  }
 0x1ce   :  { %1331 = vmatpush1.bf16.msra.mxu1 %v3754_v45  ;;  %v4087_v45 = vmov 65535  }
 0x1cf   :  { %1332 = vmatprep.subr.bf16.mxu1 %v3759_v46  ;;  %v1575_v46 = vsel %vm1573_vm1, 4294967295, %v4087_v45  ;;  %v3857_v45 = vld [vmem:[%s5403_s14 + $0x30] ss:$8 sps:$4 sm:$0xff]  }
 0x1d2   :  { %1333 = vmatpush1.bf16.msra.mxu1 %v3757_v47  ;;  %v3799_v47 = vld [vmem:[%s5397_s10 + $0x4] ss:$8 sps:$4 sm:$0xff]  }
 0x1d3   :  { %1334 = vmatprep.subr.bf16.mxu1 %v3762_v48  ;;  %v1576_v48 = vsel %vm1574_vm2, %v1575_v46, 0  ;;  %v3862_v46 = vld [vmem:[%s5403_s14 + $0x44] ss:$8 sps:$4 sm:$0xff]  }
 0x1d6   :  { %1335 = vmatpush1.bf16.msra.mxu1 %v3760_v49  ;;  %v1578_v49 = vand.u32 %v3797_v44, %v1576_v48  ;;  %v3859_v44 = vld [vmem:[%s5403_s14 + $0x34] ss:$8 sps:$4 sm:$0xff]  }
 0x1d7   :  { %1336 = vmatprep.subr.bf16.mxu1 %v3765_v50  ;;  %v1581_v50 = vand.u32 %v3799_v47, %v1576_v48  ;;  %v3860_v47 = vld [vmem:[%s5403_s14 + $0x40] ss:$8 sps:$4 sm:$0xff]   ;;  %v3865_v48 = vld [vmem:[%s5403_s14 + $0x54] ss:$8 sps:$4 sm:$0xff]  }
 0x1da   :  { %1337 = vmatpush1.bf16.msra.mxu1 %v3763_v51 }
 0x1db   :  { %1338 = vmatprep.subr.bf16.mxu1 %v3768_v52 }
 0x1de   :  { %1339 = vmatpush1.bf16.msra.mxu1 %v3766_v53 }
 0x1df   :  { %1340 = vmatprep.subr.bf16.mxu1 %v3771_v54 }
 0x1e2   :  { %1341 = vmatpush1.bf16.msra.mxu1 %v3769_v55 }
 0x1e3   :  { %1342 = vmatprep.subr.bf16.mxu1 %v3774_v56 }
 0x1e6   :  { %1343 = vmatpush1.bf16.msra.mxu1 %v3772_v57 }
 0x1e7   :  { %1344 = vmatprep.subr.bf16.mxu1 %v3777_v58 }
 0x1ea   :  { %1345 = vmatpush1.bf16.msra.mxu1 %v3775_v59  ;;  %v3802_v59 = vld [vmem:[%s5400_s12 + $0x4] ss:$8 sps:$4 sm:$0xff]  }
 0x1eb   :  { %1346 = vmatprep.subr.bf16.mxu1 %v3780_v60 }
 0x1ee   :  { %1347 = vmatpush1.bf16.msra.mxu1 %v3778_v61  ;;  %v1536_v61 = vld [vmem:[%s5401_s1] sm:$0xff] }
 0x1ef   :  { %3470 = vmatprep.subr.bf16.mxu1 %v3781_v62 }
 0x284   :  { %v1101_v2 = vpop.f32.mrb[0].mxu1 }
 0x285   :  { %v1102_v3 = vadd.f32 %v1101_v2, %v900_v0  ;;  %v1103_v4 = vpop.f32.mrb[1].mxu1  ;;  %v3800_v2 = vld [vmem:[%s5400_s12] ss:$8 sps:$4 sm:$0xff]  }
 0x286   :  { %v1104_v5 = vadd.f32 %v1103_v4, %v904_v1  ;;  %v1105_v6 = vpop.f32.mrb[2].mxu1  ;;  %v3805_v4 = vld [vmem:[%s5400_s12 + $0x14] ss:$8 sps:$4 sm:$0xff]  }
 0x287   :  { %v1108_v8 = vmax.f32 %v1102_v3, 0.0  ;;  %v1106_v9 = vpop.f32.mrb[3].mxu1  ;;  %v3808_v6 = vld [vmem:[%s5400_s12 + $0x24] ss:$8 sps:$4 sm:$0xff]  }
 0x288   :  { %v1109_v10 = vmax.f32 %v1104_v5, 0.0  ;;  %v3803_v5 = vld [vmem:[%s5400_s12 + $0x10] ss:$8 sps:$4 sm:$0xff]   ;;  %v3811_v9 = vld [vmem:[%s5400_s12 + $0x34] ss:$8 sps:$4 sm:$0xff]  }
 0x289   :  { %v1110_v13 = vpack.c.bf16 %v1108_v8, %v1108_v8  ;;  %v3806_v8 = vld [vmem:[%s5400_s12 + $0x20] ss:$8 sps:$4 sm:$0xff]  }
 0x28a   :  { %v1111_v11 = vpack.c.bf16 %v1109_v10, %v1109_v10  ;;  %v3809_v10 = vld [vmem:[%s5400_s12 + $0x30] ss:$8 sps:$4 sm:$0xff]  }
 0x28c   :  { %1348 = vmatprep.mubr.bf16.mxu1 %v1111_v11  ;;  %v3814_v11 = vld [vmem:[%s5400_s12 + $0x44] ss:$8 sps:$4 sm:$0xff]  }
 0x28d   :  { %1349 = vmatmul.mubr.bf16.vlgmr.msra.gmra.mrb[4].mxu1 %v1110_v13  ;;  %v3817_v13 = vld [vmem:[%s5400_s12 + $0x54] ss:$8 sps:$4 sm:$0xff]  }
 0x28e   :  { %3471 = vmatpush3.bf16.msra.mxu1 %v3782_v12  ;;  %v3812_v12 = vld [vmem:[%s5400_s12 + $0x40] ss:$8 sps:$4 sm:$0xff]  }
 0x28f   :  { %3472 = vmatprep.subr.bf16.mxu1 %v3783_v14  ;;  %v3815_v14 = vld [vmem:[%s5400_s12 + $0x50] ss:$8 sps:$4 sm:$0xff]  }
 0x292   :  { %3473 = vmatpush3.bf16.msra.mxu1 %v3784_v17  ;;  %v3820_v17 = vld [vmem:[%s5400_s12 + $0x64] ss:$8 sps:$4 sm:$0xff]  }
 0x293   :  { %3474 = vmatprep.subr.bf16.mxu1 %v3785_v19  ;;  %v3818_v19 = vld [vmem:[%s5400_s12 + $0x60] ss:$8 sps:$4 sm:$0xff]  }
 0x296   :  { %3475 = vmatpush3.bf16.msra.mxu1 %v3786_v20  ;;  %v3823_v20 = vld [vmem:[%s5400_s12 + $0x74] ss:$8 sps:$4 sm:$0xff]  }
 0x297   :  { %3476 = vmatprep.subr.bf16.mxu1 %v3787_v21  ;;  %v3821_v21 = vld [vmem:[%s5400_s12 + $0x70] ss:$8 sps:$4 sm:$0xff]  }
 0x29a   :  { %3477 = vmatpush3.bf16.msra.mxu1 %v3788_v22  ;;  %v3826_v22 = vld [vmem:[%s5400_s12 + $0x84] ss:$8 sps:$4 sm:$0xff]  }
 0x29b   :  { %3478 = vmatprep.subr.bf16.mxu1 %v3789_v23  ;;  %v3824_v23 = vld [vmem:[%s5400_s12 + $0x80] ss:$8 sps:$4 sm:$0xff]  }
 0x29e   :  { %3479 = vmatpush3.bf16.msra.mxu1 %v3790_v24  ;;  %v3829_v24 = vld [vmem:[%s5400_s12 + $0x94] ss:$8 sps:$4 sm:$0xff]  }
 0x29f   :  { %3480 = vmatprep.subr.bf16.mxu1 %v3791_v25  ;;  %v3827_v25 = vld [vmem:[%s5400_s12 + $0x90] ss:$8 sps:$4 sm:$0xff]  }
 0x2a2   :  { %3481 = vmatpush3.bf16.msra.mxu1 %v3792_v26  ;;  %v3832_v26 = vld [vmem:[%s5400_s12 + $0xa4] ss:$8 sps:$4 sm:$0xff]  }
 0x2a3   :  { %3482 = vmatprep.subr.bf16.mxu1 %v3793_v27  ;;  %v3830_v27 = vld [vmem:[%s5400_s12 + $0xa0] ss:$8 sps:$4 sm:$0xff]  }
 0x2a6   :  { %3483 = vmatpush3.bf16.msra.mxu1 %v3794_v28  ;;  %v3835_v28 = vld [vmem:[%s5400_s12 + $0xb4] ss:$8 sps:$4 sm:$0xff]  }
 0x2a7   :  { %3484 = vmatprep.subr.bf16.mxu1 %v3795_v29  ;;  %v3833_v29 = vld [vmem:[%s5400_s12 + $0xb0] ss:$8 sps:$4 sm:$0xff]  }
 0x2aa   :  { %3485 = vmatpush3.bf16.msra.mxu1 %v3796_v30  ;;  %v3838_v30 = vld [vmem:[%s5400_s12 + $0xc4] ss:$8 sps:$4 sm:$0xff]  }
 0x2ab   :  { %1583 = vmatprep.subr.bf16.mxu1 %v1581_v50  ;;  %v3868_v50 = vld [vmem:[%s5403_s14 + $0x64] ss:$8 sps:$4 sm:$0xff]  }
 0x360   :  { %v1350_v34 = vpop.f32.mrb[4].mxu1 }
 0x361   :  { %v1351_v36 = vadd.f32 %v1350_v34, %v1149_v32  ;;  %v1352_v37 = vpop.f32.mrb[5].mxu1  ;;  %v3841_v32 = vld [vmem:[%s5400_s12 + $0xd4] ss:$8 sps:$4 sm:$0xff]   ;;  %v3844_v34 = vld [vmem:[%s5400_s12 + $0xe4] ss:$8 sps:$4 sm:$0xff]  }
 0x362   :  { %v1353_v35 = vadd.f32 %v1352_v37, %v1153_v33  ;;  %v1354_v38 = vpop.f32.mrb[6].mxu1  ;;  %v3839_v33 = vld [vmem:[%s5400_s12 + $0xd0] ss:$8 sps:$4 sm:$0xff]   ;;  %v3847_v37 = vld [vmem:[%s5400_s12 + $0xf4] ss:$8 sps:$4 sm:$0xff]  }
 0x363   :  { %v1357_v39 = vmax.f32 %v1351_v36, 0.0  ;;  %v1355_v40 = vpop.f32.mrb[7].mxu1  ;;  %v3842_v36 = vld [vmem:[%s5400_s12 + $0xe0] ss:$8 sps:$4 sm:$0xff]  }
 0x364   :  { %v1358_v41 = vmax.f32 %v1353_v35, 0.0  ;;  %v3845_v35 = vld [vmem:[%s5400_s12 + $0xf0] ss:$8 sps:$4 sm:$0xff]   ;;  %v3848_v38 = vld [vmem:[%s5403_s14] ss:$8 sps:$4 sm:$0xff]  }
 0x365   :  { %v1359_v43 = vpack.c.bf16 %v1357_v39, %v1357_v39  ;;  %v3850_v39 = vld [vmem:[%s5403_s14 + $0x4] ss:$8 sps:$4 sm:$0xff]   ;;  %v3853_v40 = vld [vmem:[%s5403_s14 + $0x14] ss:$8 sps:$4 sm:$0xff]  }
 0x366   :  { %v1360_v42 = vpack.c.bf16 %v1358_v41, %v1358_v41  ;;  %2081 = vmatprep.subr.bf16.mxu0 %v3850_v39  ;;  %v3851_v41 = vld [vmem:[%s5403_s14 + $0x10] ss:$8 sps:$4 sm:$0xff]   ;;  %v3946_v39 = vld [vmem:[%s5405_s16 + $0x1c4] ss:$28 sps:$4 sm:$0xff]  }
 0x367   :  { %2082 = vmatpush1.bf16.msra.mxu0 %v3848_v38  ;;  %v3938_v38 = vld [vmem:[%s5405_s16 + $0x188] ss:$28 sps:$4 sm:$0xff]  }
 0x368   :  { %1528 = vmatprep.mubr.bf16.mxu1 %v1360_v42  ;;  %2083 = vmatprep.subr.bf16.mxu0 %v3853_v40  ;;  %v3856_v42 = vld [vmem:[%s5403_s14 + $0x24] ss:$8 sps:$4 sm:$0xff]   ;;  %v3944_v40 = vld [vmem:[%s5405_s16 + $0x1c0] ss:$28 sps:$4 sm:$0xff]  }
 0x369   :  { %1529 = vmatmul.mubr.bf16.vlgmr.msra.gmra.mrb[8].mxu1 %v1359_v43  ;;  %v3854_v43 = vld [vmem:[%s5403_s14 + $0x20] ss:$8 sps:$4 sm:$0xff]  }
 0x36a   :  { %1615 = vmatprep.mubr.bf16.mxu1 %v4086_v7  ;;  %1584 = vmatpush1.bf16.msra.mxu1 %v1578_v49  ;;  %v3267_v7 = vld [vmem:[%s5398_s9] ss:$0 sm:$0xff]  ;;  %s4088_s9 = smov 113   ;;  %v3863_v49 = vld [vmem:[%s5403_s14 + $0x50] ss:$8 sps:$4 sm:$0xff]  }
 0x36b   :  { %1832 = vmatprep.subr.bf16.mxu1 %v3802_v59  ;;  %2084 = vmatpush1.bf16.msra.mxu0 %v3851_v41  ;;  %v3883_v59 = vld [vmem:[%s5403_s14 + $0xb4] ss:$8 sps:$4 sm:$0xff]  }
 0x36c   :  { %2085 = vmatprep.subr.bf16.mxu0 %v3856_v42  ;;  %v3952_v41 = vld [vmem:[%s5405_s16 + $0x1fc] ss:$28 sps:$4 sm:$0xff]  }
 0x36d   :  { %v3950_v42 = vld [vmem:[%s5405_s16 + $0x1f8] ss:$28 sps:$4 sm:$0xff]  }
 0x36f   :  { %2086 = vmatpush1.bf16.msra.mxu0 %v3854_v43  ;;  %v3958_v43 = vld [vmem:[%s5405_s16 + $0x234] ss:$28 sps:$4 sm:$0xff]  }
 0x370   :  { %2087 = vmatprep.subr.bf16.mxu0 %v3859_v44  ;;  %v3956_v44 = vld [vmem:[%s5405_s16 + $0x230] ss:$28 sps:$4 sm:$0xff]  }
 0x373   :  { %2088 = vmatpush1.bf16.msra.mxu0 %v3857_v45  ;;  %v3964_v45 = vld [vmem:[%s5405_s16 + $0x26c] ss:$28 sps:$4 sm:$0xff]  }
 0x374   :  { %2089 = vmatprep.subr.bf16.mxu0 %v3862_v46  ;;  %v3962_v46 = vld [vmem:[%s5405_s16 + $0x268] ss:$28 sps:$4 sm:$0xff]  }
 0x377   :  { %2090 = vmatpush1.bf16.msra.mxu0 %v3860_v47  ;;  %v3970_v47 = vld [vmem:[%s5405_s16 + $0x2a4] ss:$28 sps:$4 sm:$0xff]  }
 0x378   :  { %2091 = vmatprep.subr.bf16.mxu0 %v3865_v48  ;;  %v3968_v48 = vld [vmem:[%s5405_s16 + $0x2a0] ss:$28 sps:$4 sm:$0xff]  }
 0x37b   :  { %2092 = vmatpush1.bf16.msra.mxu0 %v3863_v49  ;;  %v3976_v49 = vld [vmem:[%s5405_s16 + $0x2dc] ss:$28 sps:$4 sm:$0xff]  }
 0x37c   :  { %2093 = vmatprep.subr.bf16.mxu0 %v3868_v50  ;;  %v3974_v50 = vld [vmem:[%s5405_s16 + $0x2d8] ss:$28 sps:$4 sm:$0xff]  }
 0x43c   :  { %v3486_v51 = vpop.f32.mrb[8].mxu1 }
 0x43d   :  { %v3487_v52 = vpop.f32.mrb[9].mxu1 }
 0x43e   :  { %v3488_v53 = vadd.f32 %v3487_v52, %v3486_v51  ;;  %v3489_v54 = vpop.f32.mrb[10].mxu1  ;;  %v3866_v51 = vld [vmem:[%s5403_s14 + $0x60] ss:$8 sps:$4 sm:$0xff]   ;;  %v3869_v52 = vld [vmem:[%s5403_s14 + $0x70] ss:$8 sps:$4 sm:$0xff]  }
 0x43f   :  { %v3490_v55 = vpop.f32.mrb[11].mxu1  ;;  %2094 = vmatpush1.bf16.msra.mxu0 %v3866_v51  ;;  %v3872_v54 = vld [vmem:[%s5403_s14 + $0x80] ss:$8 sps:$4 sm:$0xff]  }
 0x440   :  { %v1531_v56 = vadd.f32 %v3488_v53, %v3267_v7  ;;  %v3871_v7 = vld [vmem:[%s5403_s14 + $0x74] ss:$8 sps:$4 sm:$0xff]   ;;  %v3874_v53 = vld [vmem:[%s5403_s14 + $0x84] ss:$8 sps:$4 sm:$0xff]   ;;  %v1660_v51 = vld [vmem:[%s5406_s13] sm:$0x3] }
 0x441   :  { %2095 = vmatprep.subr.bf16.mxu0 %v3871_v7  ;;  %v3877_v55 = vld [vmem:[%s5403_s14 + $0x94] ss:$8 sps:$4 sm:$0xff]   ;;  %v1665_v7 = vrot.slane %v1660_v51, %v4616_v16 }
 0x442   :  { %v1537_v57 = vmul.f32 0.5, %v1531_v56  ;;  %3079 = vst.msk [vmem:[%s5399_s19] sm:$0xff] %vm1569_vm3, %v1531_v56 }
 0x443   :  { %2096 = vmatpush1.bf16.msra.mxu0 %v3869_v52  ;;  %v1669_v52 = vrot.slane %v1660_v51, %v4622_v18 }
 0x444   :  { %v1538_v58 = vmul.f32 1.442695, %v1537_v57  ;;  %2097 = vmatprep.subr.bf16.mxu0 %v3874_v53  ;;  %v3880_v57 = vld [vmem:[%s5403_s14 + $0xa4] ss:$8 sps:$4 sm:$0xff]  }
 0x446   :  { %4056 = vpow2.f32 %v1538_v58  ;;  %v3878_v58 = vld [vmem:[%s5403_s14 + $0xa0] ss:$8 sps:$4 sm:$0xff]  }
 0x447   :  { %2098 = vmatpush1.bf16.msra.mxu0 %v3872_v54 }
 0x448   :  { %2099 = vmatprep.subr.bf16.mxu0 %v3877_v55 }
 0x450   :  { %v4057_v60 = vpop.eup %4056 }
 0x451   :  { %1541 = vrot.lane.b32.xlu0 %v4057_v60, %s4088_s9  ;;  %v3881_v60 = vld [vmem:[%s5403_s14 + $0xb0] ss:$8 sps:$4 sm:$0xff]  }
 0x455   :  { %3081 = vrot.lane.b32.xlu0 %v1531_v56, %s4088_s9 }
 0x4c3   :  { %v1542_v62 = vpop.permute.xlu0 %1541 }
 0x4c4   :  { %v1544_v63 = vmul.f32 %v1542_v62, %v1536_v61  ;;  %v3886_v61 = vld [vmem:[%s5403_s14 + $0xc4] ss:$8 sps:$4 sm:$0xff]   ;;  %v3884_v62 = vld [vmem:[%s5403_s14 + $0xc0] ss:$8 sps:$4 sm:$0xff]  }
 0x4c6   :  { %v1545_v0 = vadd.f32 %v1544_v63, %v1531_v56  ;;  %v3875_v56 = vld [vmem:[%s5403_s14 + $0x90] ss:$8 sps:$4 sm:$0xff]   ;;  %v3889_v63 = vld [vmem:[%s5403_s14 + $0xd4] ss:$8 sps:$4 sm:$0xff]  }
 0x4c7   :  { %v3082_v1 = vpop.permute.xlu0 %3081  ;;  %2100 = vmatpush1.bf16.msra.mxu0 %v3875_v56 }
 0x4c8   :  { %v1546_v3 = vpack.c.bf16 %v1545_v0, %v1545_v0  ;;  %3084 = vst.msk [vmem:[%s5402_s20] sm:$0xff] %vm1569_vm3, %v3082_v1  ;;  %2101 = vmatprep.subr.bf16.mxu0 %v3880_v57  ;;  %v3887_v0 = vld [vmem:[%s5403_s14 + $0xd0] ss:$8 sps:$4 sm:$0xff]   ;;  %v1549_v1 = vld [vmem:[%s5404_s11] sm:$0x3] }
 0x4ca   :  { %3286 = vmatmul.mubr.msk.bf16.vlgmr.msra.gmra.mrb[12].mxu1 %vm1569_vm3, %v1546_v3  ;;  %v1558_v3 = vrot.slane %v1549_v1, %v4622_v18 }
 0x4cb   :  { %1833 = vmatpush1.bf16.msra.mxu1 %v3800_v2  ;;  %2102 = vmatpush1.bf16.msra.mxu0 %v3878_v58  ;;  %v1554_v2 = vrot.slane %v1549_v1, %v4616_v16  ;;  %v3905_v1 = vld [vmem:[%s5405_s16 + $0x40] ss:$28 sps:$4 sm:$0xff]  }
 0x4cc   :  { %1834 = vmatprep.subr.bf16.mxu1 %v3805_v4  ;;  %2103 = vmatprep.subr.bf16.mxu0 %v3883_v59 }
 0x4cf   :  { %1835 = vmatpush1.bf16.msra.mxu1 %v3803_v5  ;;  %2104 = vmatpush1.bf16.msra.mxu0 %v3881_v60 }
 0x4d0   :  { %1836 = vmatprep.subr.bf16.mxu1 %v3808_v6  ;;  %2105 = vmatprep.subr.bf16.mxu0 %v3886_v61 }
 0x4d3   :  { %1837 = vmatpush1.bf16.msra.mxu1 %v3806_v8  ;;  %2106 = vmatpush1.bf16.msra.mxu0 %v3884_v62  ;;  %v3899_v62 = vld [vmem:[%s5405_s16 + $0x8] ss:$28 sps:$4 sm:$0xff]  }
 0x4d4   :  { %1838 = vmatprep.subr.bf16.mxu1 %v3811_v9  ;;  %2107 = vmatprep.subr.bf16.mxu0 %v3889_v63 }
 0x4d7   :  { %1839 = vmatpush1.bf16.msra.mxu1 %v3809_v10  ;;  %2108 = vmatpush1.bf16.msra.mxu0 %v3887_v0  ;;  %v3907_v0 = vld [vmem:[%s5405_s16 + $0x44] ss:$28 sps:$4 sm:$0xff]  }
 0x4d8   :  { %1840 = vmatprep.subr.bf16.mxu1 %v3814_v11 }
 0x4db   :  { %1841 = vmatpush1.bf16.msra.mxu1 %v3812_v12 }
 0x4dc   :  { %1842 = vmatprep.subr.bf16.mxu1 %v3817_v13 }
 0x4df   :  { %1843 = vmatpush1.bf16.msra.mxu1 %v3815_v14 }
 0x4e0   :  { %1844 = vmatprep.subr.bf16.mxu1 %v3820_v17  ;;  %v3892_v17 = vld [vmem:[%s5403_s14 + $0xe4] ss:$8 sps:$4 sm:$0xff]  }
 0x4e1   :  { %2109 = vmatprep.subr.bf16.mxu0 %v3892_v17  ;;  %v3949_v17 = vld [vmem:[%s5405_s16 + $0x1cc] ss:$28 sps:$4 sm:$0xff]  }
 0x4e3   :  { %1845 = vmatpush1.bf16.msra.mxu1 %v3818_v19  ;;  %v3890_v19 = vld [vmem:[%s5403_s14 + $0xe0] ss:$8 sps:$4 sm:$0xff]  }
 0x4e4   :  { %1846 = vmatprep.subr.bf16.mxu1 %v3823_v20  ;;  %2110 = vmatpush1.bf16.msra.mxu0 %v3890_v19  ;;  %v3895_v20 = vld [vmem:[%s5403_s14 + $0xf4] ss:$8 sps:$4 sm:$0xff]   ;;  %v3947_v19 = vld [vmem:[%s5405_s16 + $0x1c8] ss:$28 sps:$4 sm:$0xff]  }
 0x4e5   :  { %2111 = vmatprep.subr.bf16.mxu0 %v3895_v20  ;;  %v3955_v20 = vld [vmem:[%s5405_s16 + $0x204] ss:$28 sps:$4 sm:$0xff]  }
 0x4e7   :  { %1847 = vmatpush1.bf16.msra.mxu1 %v3821_v21  ;;  %v3893_v21 = vld [vmem:[%s5403_s14 + $0xf0] ss:$8 sps:$4 sm:$0xff]  }
 0x4e8   :  { %1848 = vmatprep.subr.bf16.mxu1 %v3826_v22  ;;  %2112 = vmatpush1.bf16.msra.mxu0 %v3893_v21  ;;  %v3896_v22 = vld [vmem:[%s5405_s16] ss:$28 sps:$4 sm:$0xff]  }
 0x4e9   :  { %v3953_v21 = vld [vmem:[%s5405_s16 + $0x200] ss:$28 sps:$4 sm:$0xff]  }
 0x4eb   :  { %1849 = vmatpush1.bf16.msra.mxu1 %v3824_v23  ;;  %v3898_v23 = vld [vmem:[%s5405_s16 + $0x4] ss:$28 sps:$4 sm:$0xff]  }
 0x4ec   :  { %1850 = vmatprep.subr.bf16.mxu1 %v3829_v24  ;;  %v3901_v24 = vld [vmem:[%s5405_s16 + $0xc] ss:$28 sps:$4 sm:$0xff]  }
 0x4ed   :  { %2908 = vmatprep.subr.bf16.mxu0 %v3901_v24  ;;  %v3967_v24 = vld [vmem:[%s5405_s16 + $0x274] ss:$28 sps:$4 sm:$0xff]  }
 0x4ef   :  { %1851 = vmatpush1.bf16.msra.mxu1 %v3827_v25  ;;  %v3904_v25 = vld [vmem:[%s5405_s16 + $0x3c] ss:$28 sps:$4 sm:$0xff]  }
 0x4f0   :  { %1852 = vmatprep.subr.bf16.mxu1 %v3832_v26  ;;  %v3902_v26 = vld [vmem:[%s5405_s16 + $0x38] ss:$28 sps:$4 sm:$0xff]  }
 0x4f3   :  { %1853 = vmatpush1.bf16.msra.mxu1 %v3830_v27  ;;  %v3910_v27 = vld [vmem:[%s5405_s16 + $0x74] ss:$28 sps:$4 sm:$0xff]  }
 0x4f4   :  { %1854 = vmatprep.subr.bf16.mxu1 %v3835_v28  ;;  %v3908_v28 = vld [vmem:[%s5405_s16 + $0x70] ss:$28 sps:$4 sm:$0xff]  }
 0x4f7   :  { %1855 = vmatpush1.bf16.msra.mxu1 %v3833_v29  ;;  %v3916_v29 = vld [vmem:[%s5405_s16 + $0xac] ss:$28 sps:$4 sm:$0xff]  }
 0x4f8   :  { %1856 = vmatprep.subr.bf16.mxu1 %v3838_v30  ;;  %v3914_v30 = vld [vmem:[%s5405_s16 + $0xa8] ss:$28 sps:$4 sm:$0xff]  }
 0x4fb   :  { %1857 = vmatpush1.bf16.msra.mxu1 %v3836_v31  ;;  %v3922_v31 = vld [vmem:[%s5405_s16 + $0xe4] ss:$28 sps:$4 sm:$0xff]  }
 0x4fc   :  { %1858 = vmatprep.subr.bf16.mxu1 %v3841_v32  ;;  %v3920_v32 = vld [vmem:[%s5405_s16 + $0xe0] ss:$28 sps:$4 sm:$0xff]  }
 0x4ff   :  { %1859 = vmatpush1.bf16.msra.mxu1 %v3839_v33  ;;  %v3928_v33 = vld [vmem:[%s5405_s16 + $0x11c] ss:$28 sps:$4 sm:$0xff]  }
 0x500   :  { %1860 = vmatprep.subr.bf16.mxu1 %v3844_v34  ;;  %v3926_v34 = vld [vmem:[%s5405_s16 + $0x118] ss:$28 sps:$4 sm:$0xff]  }
 0x503   :  { %1861 = vmatpush1.bf16.msra.mxu1 %v3842_v36  ;;  %v3934_v36 = vld [vmem:[%s5405_s16 + $0x154] ss:$28 sps:$4 sm:$0xff]  }
 0x504   :  { %1862 = vmatprep.subr.bf16.mxu1 %v3847_v37  ;;  %v3932_v37 = vld [vmem:[%s5405_s16 + $0x150] ss:$28 sps:$4 sm:$0xff]  }
 0x507   :  { %1863 = vmatpush1.bf16.msra.mxu1 %v3845_v35  ;;  %v3940_v35 = vld [vmem:[%s5405_s16 + $0x18c] ss:$28 sps:$4 sm:$0xff]  }
 0x508   :  { %2867 = vmatprep.subr.bf16.mxu1 %v3898_v23  ;;  %v3959_v23 = vld [vmem:[%s5405_s16 + $0x238] ss:$28 sps:$4 sm:$0xff]  }
 0x59d   :  { %v1617_v4 = vpop.f32.mrb[12].mxu1 }
 0x59e   :  { %v1618_v5 = vadd.f32 %v1617_v4, %v1554_v2  ;;  %v1619_v6 = vpop.f32.mrb[13].mxu1  ;;  %v3913_v2 = vld [vmem:[%s5405_s16 + $0x7c] ss:$28 sps:$4 sm:$0xff]   ;;  %v3919_v4 = vld [vmem:[%s5405_s16 + $0xb4] ss:$28 sps:$4 sm:$0xff]  }
 0x59f   :  { %v1620_v8 = vadd.f32 %v1619_v6, %v1558_v3  ;;  %v1621_v9 = vpop.f32.mrb[14].mxu1  ;;  %v3911_v3 = vld [vmem:[%s5405_s16 + $0x78] ss:$28 sps:$4 sm:$0xff]   ;;  %v3925_v6 = vld [vmem:[%s5405_s16 + $0xec] ss:$28 sps:$4 sm:$0xff]  }
 0x5a0   :  { %v1624_v10 = vmax.f32 %v1618_v5, 0.0  ;;  %v1622_v11 = vpop.f32.mrb[15].mxu1  ;;  %v3917_v5 = vld [vmem:[%s5405_s16 + $0xb0] ss:$28 sps:$4 sm:$0xff]   ;;  %v3931_v9 = vld [vmem:[%s5405_s16 + $0x124] ss:$28 sps:$4 sm:$0xff]  }
 0x5a1   :  { %v1625_v12 = vmax.f32 %v1620_v8, 0.0  ;;  %v3923_v8 = vld [vmem:[%s5405_s16 + $0xe8] ss:$28 sps:$4 sm:$0xff]   ;;  %v3937_v11 = vld [vmem:[%s5405_s16 + $0x15c] ss:$28 sps:$4 sm:$0xff]  }
 0x5a2   :  { %v1626_v14 = vpack.c.bf16 %v1624_v10, %v1624_v10  ;;  %v3929_v10 = vld [vmem:[%s5405_s16 + $0x120] ss:$28 sps:$4 sm:$0xff]  }
 0x5a3   :  { %v1627_v13 = vpack.c.bf16 %v1625_v12, %v1625_v12  ;;  %v3935_v12 = vld [vmem:[%s5405_s16 + $0x158] ss:$28 sps:$4 sm:$0xff]  }
 0x5a5   :  { %1864 = vmatprep.mubr.bf16.mxu1 %v1627_v13  ;;  %v3943_v13 = vld [vmem:[%s5405_s16 + $0x194] ss:$28 sps:$4 sm:$0xff]  }
 0x5a6   :  { %1865 = vmatmul.mubr.bf16.vlgmr.msra.gmra.mrb[16].mxu1 %v1626_v14  ;;  %v3941_v14 = vld [vmem:[%s5405_s16 + $0x190] ss:$28 sps:$4 sm:$0xff]  }
 0x5a7   :  { %2868 = vmatpush1.bf16.msra.mxu1 %v3896_v22  ;;  %v3961_v22 = vld [vmem:[%s5405_s16 + $0x23c] ss:$28 sps:$4 sm:$0xff]  }
 0x5a8   :  { %2869 = vmatprep.subr.bf16.mxu1 %v3904_v25  ;;  %v3965_v25 = vld [vmem:[%s5405_s16 + $0x270] ss:$28 sps:$4 sm:$0xff]  }
 0x5ab   :  { %2870 = vmatpush1.bf16.msra.mxu1 %v3902_v26  ;;  %v3973_v26 = vld [vmem:[%s5405_s16 + $0x2ac] ss:$28 sps:$4 sm:$0xff]  }
 0x5ac   :  { %2871 = vmatprep.subr.bf16.mxu1 %v3910_v27  ;;  %v3971_v27 = vld [vmem:[%s5405_s16 + $0x2a8] ss:$28 sps:$4 sm:$0xff]  }
 0x5af   :  { %2872 = vmatpush1.bf16.msra.mxu1 %v3908_v28  ;;  %v3979_v28 = vld [vmem:[%s5405_s16 + $0x2e4] ss:$28 sps:$4 sm:$0xff]  }
 0x5b0   :  { %2873 = vmatprep.subr.bf16.mxu1 %v3916_v29  ;;  %v3977_v29 = vld [vmem:[%s5405_s16 + $0x2e0] ss:$28 sps:$4 sm:$0xff]  }
 0x5b3   :  { %2874 = vmatpush1.bf16.msra.mxu1 %v3914_v30  ;;  %v3982_v30 = vld [vmem:[%s5405_s16 + $0x314] ss:$28 sps:$4 sm:$0xff]  }
 0x5b4   :  { %2875 = vmatprep.subr.bf16.mxu1 %v3922_v31  ;;  %v3985_v31 = vld [vmem:[%s5405_s16 + $0x31c] ss:$28 sps:$4 sm:$0xff]  }
 0x5b7   :  { %2876 = vmatpush1.bf16.msra.mxu1 %v3920_v32  ;;  %v3980_v32 = vld [vmem:[%s5405_s16 + $0x310] ss:$28 sps:$4 sm:$0xff]  }
 0x5b8   :  { %2877 = vmatprep.subr.bf16.mxu1 %v3928_v33  ;;  %v3983_v33 = vld [vmem:[%s5405_s16 + $0x318] ss:$28 sps:$4 sm:$0xff]  }
 0x5bb   :  { %2878 = vmatpush1.bf16.msra.mxu1 %v3926_v34  ;;  %v3988_v34 = vld [vmem:[%s5405_s16 + $0x34c] ss:$28 sps:$4 sm:$0xff]  }
 0x5bc   :  { %2879 = vmatprep.subr.bf16.mxu1 %v3934_v36  ;;  %v3991_v36 = vld [vmem:[%s5405_s16 + $0x354] ss:$28 sps:$4 sm:$0xff]  }
 0x5bf   :  { %2880 = vmatpush1.bf16.msra.mxu1 %v3932_v37  ;;  %v3986_v37 = vld [vmem:[%s5405_s16 + $0x348] ss:$28 sps:$4 sm:$0xff]  }
 0x5c0   :  { %2881 = vmatprep.subr.bf16.mxu1 %v3940_v35  ;;  %v3989_v35 = vld [vmem:[%s5405_s16 + $0x350] ss:$28 sps:$4 sm:$0xff]  }
 0x5c3   :  { %2882 = vmatpush1.bf16.msra.mxu1 %v3938_v38  ;;  %v3994_v38 = vld [vmem:[%s5405_s16 + $0x14] ss:$28 sps:$4 sm:$0xff]  }
 0x5c4   :  { %2883 = vmatprep.subr.bf16.mxu1 %v3946_v39  ;;  %v3995_v39 = vld [vmem:[%s5405_s16 + $0x1d8] ss:$28 sps:$4 sm:$0xff]  }
 0x5c7   :  { %2884 = vmatpush1.bf16.msra.mxu1 %v3944_v40  ;;  %v1909_v40 = vld [vmem:[%s5407_s15] sm:$0x3] }
 0x5c8   :  { %2885 = vmatprep.subr.bf16.mxu1 %v3952_v41  ;;  %v1914_v41 = vrot.slane %v1909_v40, %v4616_v16 }
 0x5cb   :  { %2886 = vmatpush1.bf16.msra.mxu1 %v3950_v42  ;;  %v1918_v42 = vrot.slane %v1909_v40, %v4622_v18  ;;  %v2270_v40 = vsub.s32 3, %v4613_v15 }
 0x5cc   :  { %2887 = vmatprep.subr.bf16.mxu1 %v3958_v43 }
 0x5cf   :  { %2888 = vmatpush1.bf16.msra.mxu1 %v3956_v44 }
 0x5d0   :  { %2889 = vmatprep.subr.bf16.mxu1 %v3964_v45 }
 0x5d3   :  { %2890 = vmatpush1.bf16.msra.mxu1 %v3962_v46 }
 0x5d4   :  { %2891 = vmatprep.subr.bf16.mxu1 %v3970_v47 }
 0x5d7   :  { %2892 = vmatpush1.bf16.msra.mxu1 %v3968_v48 }
 0x5d8   :  { %2893 = vmatprep.subr.bf16.mxu1 %v3976_v49 }
 0x5db   :  { %2894 = vmatpush1.bf16.msra.mxu1 %v3974_v50 }
 0x5dc   :  { %2895 = vmatprep.subr.bf16.mxu1 %v3982_v30  ;;  %v4046_v30 = vld [vmem:[%s5405_s16 + $0x2b4] ss:$28 sps:$4 sm:$0xff]  }
 0x5df   :  { %2896 = vmatpush1.bf16.msra.mxu1 %v3980_v32  ;;  %v4049_v32 = vld [vmem:[%s5405_s16 + $0x2ec] ss:$28 sps:$4 sm:$0xff]  }
 0x5e0   :  { %2897 = vmatprep.subr.bf16.mxu1 %v3988_v34  ;;  %v4052_v34 = vld [vmem:[%s5405_s16 + $0x324] ss:$28 sps:$4 sm:$0xff]  }
 0x5e3   :  { %2898 = vmatpush1.bf16.msra.mxu1 %v3986_v37  ;;  %v4055_v37 = vld [vmem:[%s5405_s16 + $0x35c] ss:$28 sps:$4 sm:$0xff]  }
 0x5e4   :  { %2949 = vmatprep.subr.bf16.mxu1 %v3994_v38  ;;  %v2266_v38 = vsub.s32 2, %v4613_v15 }
 0x679   :  { %v1866_v53 = vpop.f32.mrb[16].mxu1 }
 0x67a   :  { %v1867_v54 = vadd.f32 %v1866_v53, %v1665_v7  ;;  %v1868_v55 = vpop.f32.mrb[17].mxu1  ;;  %v3992_v7 = vld [vmem:[%s5405_s16 + $0x10] ss:$28 sps:$4 sm:$0xff]  }
 0x67b   :  { %v1869_v56 = vadd.f32 %v1868_v55, %v1669_v52  ;;  %v1870_v57 = vpop.f32.mrb[18].mxu1  ;;  %v3996_v52 = vld [vmem:[%s5405_s16 + $0x18] ss:$28 sps:$4 sm:$0xff]   ;;  %v4000_v55 = vld [vmem:[%s5405_s16 + $0x210] ss:$28 sps:$4 sm:$0xff]  }
 0x67c   :  { %v1873_v58 = vmax.f32 %v1867_v54, 0.0  ;;  %v1871_v59 = vpop.f32.mrb[19].mxu1  ;;  %v3999_v54 = vld [vmem:[%s5405_s16 + $0x4c] ss:$28 sps:$4 sm:$0xff]  }
 0x67d   :  { %v1874_v60 = vmax.f32 %v1869_v56, 0.0  ;;  %v3997_v56 = vld [vmem:[%s5405_s16 + $0x48] ss:$28 sps:$4 sm:$0xff]   ;;  %v4001_v57 = vld [vmem:[%s5405_s16 + $0x50] ss:$28 sps:$4 sm:$0xff]  }
 0x67e   :  { %v1875_v63 = vpack.c.bf16 %v1873_v58, %v1873_v58  ;;  %v4004_v58 = vld [vmem:[%s5405_s16 + $0x84] ss:$28 sps:$4 sm:$0xff]  }
 0x67f   :  { %v1876_v61 = vpack.c.bf16 %v1874_v60, %v1874_v60  ;;  %v4005_v59 = vld [vmem:[%s5405_s16 + $0x248] ss:$28 sps:$4 sm:$0xff]   ;;  %v4002_v60 = vld [vmem:[%s5405_s16 + $0x80] ss:$28 sps:$4 sm:$0xff]  }
 0x681   :  { %2113 = vmatprep.mubr.bf16.mxu0 %v1876_v61  ;;  %v4006_v61 = vld [vmem:[%s5405_s16 + $0x88] ss:$28 sps:$4 sm:$0xff]  }
 0x682   :  { %2114 = vmatmul.mubr.bf16.vlgmr.msra.gmra.mrb[4].mxu0 %v1875_v63  ;;  %v4010_v63 = vld [vmem:[%s5405_s16 + $0x280] ss:$28 sps:$4 sm:$0xff]  }
 0x683   :  { %2909 = vmatpush1.bf16.msra.mxu0 %v3899_v62  ;;  %v4009_v62 = vld [vmem:[%s5405_s16 + $0xbc] ss:$28 sps:$4 sm:$0xff]  }
 0x684   :  { %2910 = vmatprep.subr.bf16.mxu0 %v3907_v0  ;;  %v4007_v0 = vld [vmem:[%s5405_s16 + $0xb8] ss:$28 sps:$4 sm:$0xff]  }
 0x687   :  { %2911 = vmatpush1.bf16.msra.mxu0 %v3905_v1  ;;  %v4011_v1 = vld [vmem:[%s5405_s16 + $0xc0] ss:$28 sps:$4 sm:$0xff]  }
 0x688   :  { %2912 = vmatprep.subr.bf16.mxu0 %v3913_v2  ;;  %v4014_v2 = vld [vmem:[%s5405_s16 + $0xf4] ss:$28 sps:$4 sm:$0xff]  }
 0x68b   :  { %2913 = vmatpush1.bf16.msra.mxu0 %v3911_v3  ;;  %v4015_v3 = vld [vmem:[%s5405_s16 + $0x2b8] ss:$28 sps:$4 sm:$0xff]  }
 0x68c   :  { %2914 = vmatprep.subr.bf16.mxu0 %v3919_v4  ;;  %v4012_v4 = vld [vmem:[%s5405_s16 + $0xf0] ss:$28 sps:$4 sm:$0xff]  }
 0x68f   :  { %2915 = vmatpush1.bf16.msra.mxu0 %v3917_v5  ;;  %v4016_v5 = vld [vmem:[%s5405_s16 + $0xf8] ss:$28 sps:$4 sm:$0xff]  }
 0x690   :  { %2916 = vmatprep.subr.bf16.mxu0 %v3925_v6  ;;  %v4019_v6 = vld [vmem:[%s5405_s16 + $0x12c] ss:$28 sps:$4 sm:$0xff]  }
 0x693   :  { %2917 = vmatpush1.bf16.msra.mxu0 %v3923_v8  ;;  %v4020_v8 = vld [vmem:[%s5405_s16 + $0x2f0] ss:$28 sps:$4 sm:$0xff]  }
 0x694   :  { %2918 = vmatprep.subr.bf16.mxu0 %v3931_v9  ;;  %v4017_v9 = vld [vmem:[%s5405_s16 + $0x128] ss:$28 sps:$4 sm:$0xff]  }
 0x697   :  { %2919 = vmatpush1.bf16.msra.mxu0 %v3929_v10  ;;  %v4021_v10 = vld [vmem:[%s5405_s16 + $0x130] ss:$28 sps:$4 sm:$0xff]  }
 0x698   :  { %2920 = vmatprep.subr.bf16.mxu0 %v3937_v11  ;;  %v4024_v11 = vld [vmem:[%s5405_s16 + $0x164] ss:$28 sps:$4 sm:$0xff]  }
 0x69b   :  { %2921 = vmatpush1.bf16.msra.mxu0 %v3935_v12  ;;  %v4025_v12 = vld [vmem:[%s5405_s16 + $0x328] ss:$28 sps:$4 sm:$0xff]  }
 0x69c   :  { %2922 = vmatprep.subr.bf16.mxu0 %v3943_v13  ;;  %v4022_v13 = vld [vmem:[%s5405_s16 + $0x160] ss:$28 sps:$4 sm:$0xff]  }
 0x69f   :  { %2923 = vmatpush1.bf16.msra.mxu0 %v3941_v14  ;;  %v4026_v14 = vld [vmem:[%s5405_s16 + $0x168] ss:$28 sps:$4 sm:$0xff]  }
 0x6a0   :  { %2924 = vmatprep.subr.bf16.mxu0 %v3949_v17  ;;  %v4029_v17 = vld [vmem:[%s5405_s16 + $0x19c] ss:$28 sps:$4 sm:$0xff]  }
 0x6a3   :  { %2925 = vmatpush1.bf16.msra.mxu0 %v3947_v19  ;;  %v4030_v19 = vld [vmem:[%s5405_s16 + $0x360] ss:$28 sps:$4 sm:$0xff]  }
 0x6a4   :  { %2926 = vmatprep.subr.bf16.mxu0 %v3955_v20  ;;  %v4027_v20 = vld [vmem:[%s5405_s16 + $0x198] ss:$28 sps:$4 sm:$0xff]  }
 0x6a7   :  { %2927 = vmatpush1.bf16.msra.mxu0 %v3953_v21  ;;  %v4031_v21 = vld [vmem:[%s5405_s16 + $0x1a0] ss:$28 sps:$4 sm:$0xff]  }
 0x6a8   :  { %2928 = vmatprep.subr.bf16.mxu0 %v3961_v22  ;;  %v4034_v22 = vld [vmem:[%s5405_s16 + $0x1d4] ss:$28 sps:$4 sm:$0xff]  }
 0x6ab   :  { %2929 = vmatpush1.bf16.msra.mxu0 %v3959_v23  ;;  %v4032_v23 = vld [vmem:[%s5405_s16 + $0x1d0] ss:$28 sps:$4 sm:$0xff]  }
 0x6ac   :  { %2930 = vmatprep.subr.bf16.mxu0 %v3967_v24  ;;  %v4037_v24 = vld [vmem:[%s5405_s16 + $0x20c] ss:$28 sps:$4 sm:$0xff]  }
 0x6af   :  { %2931 = vmatpush1.bf16.msra.mxu0 %v3965_v25  ;;  %v4035_v25 = vld [vmem:[%s5405_s16 + $0x208] ss:$28 sps:$4 sm:$0xff]  }
 0x6b0   :  { %2932 = vmatprep.subr.bf16.mxu0 %v3973_v26  ;;  %v4040_v26 = vld [vmem:[%s5405_s16 + $0x244] ss:$28 sps:$4 sm:$0xff]  }
 0x6b3   :  { %2933 = vmatpush1.bf16.msra.mxu0 %v3971_v27  ;;  %v4038_v27 = vld [vmem:[%s5405_s16 + $0x240] ss:$28 sps:$4 sm:$0xff]  }
 0x6b4   :  { %2934 = vmatprep.subr.bf16.mxu0 %v3979_v28  ;;  %v4043_v28 = vld [vmem:[%s5405_s16 + $0x27c] ss:$28 sps:$4 sm:$0xff]  }
 0x6b7   :  { %2935 = vmatpush1.bf16.msra.mxu0 %v3977_v29  ;;  %v4041_v29 = vld [vmem:[%s5405_s16 + $0x278] ss:$28 sps:$4 sm:$0xff]  }
 0x6b8   :  { %2936 = vmatprep.subr.bf16.mxu0 %v3985_v31  ;;  %v4044_v31 = vld [vmem:[%s5405_s16 + $0x2b0] ss:$28 sps:$4 sm:$0xff]  }
 0x6bb   :  { %2937 = vmatpush1.bf16.msra.mxu0 %v3983_v33  ;;  %v4047_v33 = vld [vmem:[%s5405_s16 + $0x2e8] ss:$28 sps:$4 sm:$0xff]  }
 0x6bc   :  { %2938 = vmatprep.subr.bf16.mxu0 %v3991_v36  ;;  %v4050_v36 = vld [vmem:[%s5405_s16 + $0x320] ss:$28 sps:$4 sm:$0xff]  }
 0x6bf   :  { %2939 = vmatpush1.bf16.msra.mxu0 %v3989_v35  ;;  %v4053_v35 = vld [vmem:[%s5405_s16 + $0x358] ss:$28 sps:$4 sm:$0xff]  }
 0x6c0   :  { %3492 = vmatprep.subr.bf16.mxu0 %v3995_v39  ;;  %v5352_v39 = vld [vmem:[%s5408_s17] sm:$0x7f] }
 0x755   :  { %v2115_v43 = vpop.f32.mrb[4].mxu0 }
 0x756   :  { %v2116_v44 = vadd.f32 %v2115_v43, %v1914_v41  ;;  %v2117_v45 = vpop.f32.mrb[5].mxu0  ;;  %v2259_v41 = vrot.slane %v5352_v39, %v4616_v16  ;;  %v2263_v43 = vrot.slane %v5352_v39, %v4622_v18 }
 0x757   :  { %v2118_v46 = vadd.f32 %v2117_v45, %v1918_v42  ;;  %v2119_v47 = vpop.f32.mrb[6].mxu0  ;;  %v2267_v42 = vrot.slane %v5352_v39, %v2266_v38 }
 0x758   :  { %v2122_v48 = vmax.f32 %v2116_v44, 0.0  ;;  %v2120_v49 = vpop.f32.mrb[7].mxu0  ;;  %v2271_v44 = vrot.slane %v5352_v39, %v2270_v40 }
 0x759   :  { %v2123_v50 = vmax.f32 %v2118_v46, 0.0 }
 0x75a   :  { %v5210_v53 = vpack.c.bf16 %v2122_v48, %v2122_v48 }
 0x75b   :  { %v2125_v51 = vpack.c.bf16 %v2123_v50, %v2123_v50 }
 0x75d   :  { %2899 = vmatprep.mubr.bf16.mxu1 %v2125_v51  ;;  %2940 = vmatprep.mubr.bf16.mxu0 %v2125_v51 }
 0x75e   :  { %2900 = vmatmul.mubr.bf16.vlgmr.msra.gmra.mrb[20].mxu1 %v5210_v53  ;;  %2941 = vmatmul.mubr.bf16.vlgmr.msra.gmra.mrb[8].mxu0 %v5210_v53 }
 0x75f   :  { %2950 = vmatpush1.bf16.msra.mxu1 %v3992_v7  ;;  %3493 = vmatpush3.bf16.msra.mxu0 %v3996_v52 }
 0x760   :  { %2981 = vmatprep.mubr.bf16.mxu1 %v2125_v51  ;;  %3022 = vmatprep.mubr.bf16.mxu0 %v2125_v51 }
 0x761   :  { %2951 = vmatprep.subr.bf16.mxu1 %v3999_v54  ;;  %3494 = vmatprep.subr.bf16.mxu0 %v4000_v55 }
 0x763   :  { %2952 = vmatpush1.bf16.msra.mxu1 %v3997_v56  ;;  %3495 = vmatpush3.bf16.msra.mxu0 %v4001_v57 }
 0x764   :  { %2953 = vmatprep.subr.bf16.mxu1 %v4004_v58  ;;  %3496 = vmatprep.subr.bf16.mxu0 %v4005_v59 }
 0x767   :  { %2954 = vmatpush1.bf16.msra.mxu1 %v4002_v60  ;;  %3497 = vmatpush3.bf16.msra.mxu0 %v4006_v61 }
 0x768   :  { %2955 = vmatprep.subr.bf16.mxu1 %v4009_v62  ;;  %3498 = vmatprep.subr.bf16.mxu0 %v4010_v63 }
 0x76b   :  { %2956 = vmatpush1.bf16.msra.mxu1 %v4007_v0  ;;  %3499 = vmatpush3.bf16.msra.mxu0 %v4011_v1 }
 0x76c   :  { %2957 = vmatprep.subr.bf16.mxu1 %v4014_v2  ;;  %3500 = vmatprep.subr.bf16.mxu0 %v4015_v3  ;;  %v2282_v3 = vsub.s32 6, %v4613_v15 }
 0x76f   :  { %2958 = vmatpush1.bf16.msra.mxu1 %v4012_v4  ;;  %3501 = vmatpush3.bf16.msra.mxu0 %v4016_v5 }
 0x770   :  { %2959 = vmatprep.subr.bf16.mxu1 %v4019_v6  ;;  %3502 = vmatprep.subr.bf16.mxu0 %v4020_v8 }
 0x773   :  { %2960 = vmatpush1.bf16.msra.mxu1 %v4017_v9  ;;  %3503 = vmatpush3.bf16.msra.mxu0 %v4021_v10  ;;  %v2283_v9 = vrot.slane %v5352_v39, %v2282_v3 }
 0x774   :  { %2961 = vmatprep.subr.bf16.mxu1 %v4024_v11  ;;  %3504 = vmatprep.subr.bf16.mxu0 %v4025_v12 }
 0x777   :  { %2962 = vmatpush1.bf16.msra.mxu1 %v4022_v13  ;;  %3505 = vmatpush3.bf16.msra.mxu0 %v4026_v14 }
 0x778   :  { %2963 = vmatprep.subr.bf16.mxu1 %v4029_v17  ;;  %3506 = vmatprep.subr.bf16.mxu0 %v4030_v19 }
 0x77b   :  { %2964 = vmatpush1.bf16.msra.mxu1 %v4027_v20  ;;  %3507 = vmatpush3.bf16.msra.mxu0 %v4031_v21  ;;  %v2274_v21 = vsub.s32 4, %v4613_v15 }
 0x77c   :  { %2965 = vmatprep.subr.bf16.mxu1 %v4034_v22  ;;  %v2278_v22 = vsub.s32 5, %v4613_v15 }
 0x77e   :  { %3023 = vmatmul.mubr.bf16.vlgmr.msra.gmra.mrb[12].mxu0 %v5210_v53 }
 0x77f   :  { %2966 = vmatpush1.bf16.msra.mxu1 %v4032_v23  ;;  %v2275_v23 = vrot.slane %v5352_v39, %v2274_v21 }
 0x780   :  { %2967 = vmatprep.subr.bf16.mxu1 %v4037_v24  ;;  %v2279_v24 = vrot.slane %v5352_v39, %v2278_v22 }
 0x783   :  { %2968 = vmatpush1.bf16.msra.mxu1 %v4035_v25 }
 0x784   :  { %2969 = vmatprep.subr.bf16.mxu1 %v4040_v26 }
 0x787   :  { %2970 = vmatpush1.bf16.msra.mxu1 %v4038_v27 }
 0x788   :  { %2971 = vmatprep.subr.bf16.mxu1 %v4043_v28 }
 0x78b   :  { %2972 = vmatpush1.bf16.msra.mxu1 %v4041_v29 }
 0x78c   :  { %2973 = vmatprep.subr.bf16.mxu1 %v4046_v30 }
 0x78f   :  { %2974 = vmatpush1.bf16.msra.mxu1 %v4044_v31 }
 0x790   :  { %2975 = vmatprep.subr.bf16.mxu1 %v4049_v32 }
 0x793   :  { %2976 = vmatpush1.bf16.msra.mxu1 %v4047_v33 }
 0x794   :  { %2977 = vmatprep.subr.bf16.mxu1 %v4052_v34 }
 0x797   :  { %2978 = vmatpush1.bf16.msra.mxu1 %v4050_v36 }
 0x798   :  { %2979 = vmatprep.subr.bf16.mxu1 %v4055_v37 }
 0x79b   :  { %2980 = vmatpush1.bf16.msra.mxu1 %v4053_v35 }
 0x79e   :  { %2982 = vmatmul.mubr.bf16.vlgmr.msra.gmra.mrb[24].mxu1 %v5210_v53 }
 0x831   :  { %v2901_v45 = vpop.f32.mrb[20].mxu1  ;;  %v2942_v46 = vpop.f32.mrb[8].mxu0 }
 0x832   :  { %v2902_v47 = vadd.f32 %v2901_v45, %v2259_v41  ;;  %v2943_v48 = vadd.f32 %v2942_v46, %v2267_v42  ;;  %v2903_v49 = vpop.f32.mrb[21].mxu1  ;;  %v2944_v50 = vpop.f32.mrb[9].mxu0 }
 0x833   :  { %v2904_v51 = vadd.f32 %v2903_v49, %v2263_v43  ;;  %v2945_v7 = vadd.f32 %v2944_v50, %v2271_v44  ;;  %v2905_v52 = vpop.f32.mrb[22].mxu1  ;;  %v2946_v53 = vpop.f32.mrb[10].mxu0 }
 0x834   :  { %v3463_v54 = vmul.f32 -1.442695, %v2902_v47  ;;  %v3465_v55 = vmul.f32 -1.442695, %v2943_v48  ;;  %v2906_v16 = vpop.f32.mrb[23].mxu1  ;;  %v2947_v56 = vpop.f32.mrb[11].mxu0 }
 0x835   :  { %v3464_v57 = vmul.f32 -1.442695, %v2904_v51  ;;  %v3466_v58 = vmul.f32 -1.442695, %v2945_v7 }
 0x836   :  { %4058 = vpow2.f32 %v3463_v54 }
 0x837   :  { %4060 = vpow2.f32 %v3465_v55 }
 0x838   :  { %4062 = vpow2.f32 %v3464_v57 }
 0x839   :  { %4064 = vpow2.f32 %v3466_v58 }
 0x840   :  { %v4059_v18 = vpop.eup %4058 }
 0x841   :  { %v4061_v59 = vpop.eup %4060  ;;  %v3051_v60 = vadd.f32 1.0, %v4059_v18 }
 0x842   :  { %v4063_v61 = vpop.eup %4062  ;;  %v3053_v62 = vadd.f32 1.0, %v4061_v59 }
 0x843   :  { %v4065_v63 = vpop.eup %4064  ;;  %4066 = vrcp.f32 %v3051_v60  ;;  %v3052_v0 = vadd.f32 1.0, %v4063_v61 }
 0x844   :  { %4068 = vrcp.f32 %v3053_v62  ;;  %v3054_v1 = vadd.f32 1.0, %v4065_v63 }
 0x845   :  { %4070 = vrcp.f32 %v3052_v0 }
 0x846   :  { %4072 = vrcp.f32 %v3054_v1 }
 0x84d   :  { %v4067_v2 = vpop.eup %4066 }
 0x84e   :  { %v4069_v4 = vpop.eup %4068  ;;  %3072 = vst [vmem:[%s5409_s18] sm:$0xff] %v4067_v2 }
 0x84f   :  { %v4071_v5 = vpop.eup %4070  ;;  %3074 = vst [vmem:[%s5409_s18 + $0x10] sm:$0xff] %v4069_v4 }
 0x850   :  { %v4073_v6 = vpop.eup %4072  ;;  %3073 = vst [vmem:[%s5409_s18 + $0x8] sm:$0xff] %v4071_v5 }
 0x851   :  { %3075 = vst [vmem:[%s5409_s18 + $0x18] sm:$0xff] %v4073_v6  ;;  %v3508_v8 = vpop.f32.mrb[12].mxu0 }
 0x852   :  { %v3509_v10 = vpop.f32.mrb[13].mxu0 }
 0x853   :  { %v3510_v11 = vadd.f32 %v3509_v10, %v3508_v8  ;;  %v3511_v12 = vpop.f32.mrb[14].mxu0 }
 0x854   :  { %v3512_v13 = vpop.f32.mrb[15].mxu0 }
 0x855   :  { %v3025_v14 = vadd.f32 %v3510_v11, %v2283_v9 }
 0x857   :  { %v3469_v17 = vmul.f32 -1.442695, %v3025_v14 }
 0x859   :  { %4074 = vpow2.f32 %v3469_v17 }
 0x863   :  { %v4075_v19 = vpop.eup %4074 }
 0x864   :  { %v3057_v20 = vadd.f32 1.0, %v4075_v19 }
 0x866   :  { %4076 = vrcp.f32 %v3057_v20 }
 0x870   :  { %v4077_v25 = vpop.eup %4076 }
 0x871   :  { %3078 = vst.msk [vmem:[%s5409_s18 + $0x30] sm:$0xff] %vm691_vm0, %v4077_v25  ;;  %v2983_v26 = vpop.f32.mrb[24].mxu1 }
 0x872   :  { %v2984_v27 = vadd.f32 %v2983_v26, %v2275_v23  ;;  %v2985_v28 = vpop.f32.mrb[25].mxu1 }
 0x873   :  { %v2986_v29 = vadd.f32 %v2985_v28, %v2279_v24  ;;  %v2987_v30 = vpop.f32.mrb[26].mxu1 }
 0x874   :  { %v3467_v31 = vmul.f32 -1.442695, %v2984_v27  ;;  %v2988_v32 = vpop.f32.mrb[27].mxu1 }
 0x875   :  { %v3468_v33 = vmul.f32 -1.442695, %v2986_v29 }
 0x876   :  { %4078 = vpow2.f32 %v3467_v31 }
 0x877   :  { %4080 = vpow2.f32 %v3468_v33 }
 0x880   :  { %v4079_v15 = vpop.eup %4078 }
 0x881   :  { %v4081_v34 = vpop.eup %4080  ;;  %v3055_v36 = vadd.f32 1.0, %v4079_v15 }
 0x882   :  { %v3056_v37 = vadd.f32 1.0, %v4081_v34 }
 0x883   :  { %4082 = vrcp.f32 %v3055_v36 }
 0x884   :  { %4084 = vrcp.f32 %v3056_v37 }
 0x88d   :  { %v4083_v35 = vpop.eup %4082 }
 0x88e   :  { %v4085_v38 = vpop.eup %4084  ;;  %3076 = vst [vmem:[%s5409_s18 + $0x20] sm:$0xff] %v4083_v35 }
 0x88f   :  { %3077 = vst [vmem:[%s5409_s18 + $0x28] sm:$0xff] %v4085_v38 }

</bundles_post_ra>
